<compile_context>
chip_gen: v7x
topology: tpu7x:2x2x1
jax: 0.10.0
libtpu: 0.0.40
codegen_flags: <defaults>
</compile_context>

<pallas_src>
import functools
import numpy as np
import jax
import jax.numpy as jnp
from jax.experimental import pallas as pl
from jax.experimental.pallas import tpu as pltpu  # noqa: F401  (TPU-specific tuning hooks)

# ---------------- config (shrunk from SAM defaults) ----------------
IMAGE_SIZE = 64           # SAM uses 1024
PATCH = 16                # SAM ViT patch size
EMBED = 32                # SAM uses 256 for the decoder embedding
NF = IMAGE_SIZE // PATCH  # patches per side (4)
PIXEL_MEAN = np.array([123.675, 116.28, 103.53], np.float64)
PIXEL_STD = np.array([58.395, 57.12, 57.375], np.float64)


# ---------------- numpy constant builders (trace-time, static shapes only) ----------------
def _resize_matrix_np(in_size, out_size):
    # PyTorch bilinear, align_corners=False (rows sum to 1 by construction).
    dst = np.arange(out_size, dtype=np.float64)
    scale = in_size / out_size
    src = np.maximum((dst + 0.5) * scale - 0.5, 0.0)
    i0 = np.minimum(np.floor(src).astype(np.int64), in_size - 1)
    i1 = np.minimum(i0 + 1, in_size - 1)
    w1 = src - i0
    w0 = 1.0 - w1
    R = np.zeros((out_size, in_size), np.float64)
    R[np.arange(out_size), i0] += w0
    R[np.arange(out_size), i1] += w1
    return R


def _np_f32(a):
    return jnp.asarray(np.ascontiguousarray(a, dtype=np.float32))


# ---------------- fused Pallas kernel ----------------
def _fused_sam_kernel(x_ref, rh1_ref, rw1t_ref, wb_ref, wa_ref, sb_ref,
                      b1_ref, wfs_ref, bf_ref, rh2_ref, rw2t_ref,
                      logit_ref, mask_ref):
    # x:    (C*Q, H, W)    raw pixels, rows ordered (channel, query)
    # rh1:  (S, H)         bilinear H -> S (S = IMAGE_SIZE)
    # rw1t: (W, S)         bilinear W -> S, transposed
    # wb:   (C, S, NF*E)   width patch-embed factor, block-diagonal in pw
    # wa:   (C, S, NF*E)   height patch-embed factor, tiled (norm scale folded in)
    # sb:   (NF, S)        band-sum operator (sums i within each patch-row band)
    # b1:   (1, NF*E)      encoder bias (+ folded normalization offset)
    # wfs:  (NF*E, NF)     folded (enc_w2 @ dec_w) head, block-diagonal in pw
    # bf:   (1, 1)         folded head bias
    # rh2:  (th, NF), rw2t: (NF, tw)  composed 4x-upscale + resize-to-target
    C = wb_ref.shape[0]
    Q = x_ref.shape[0] // C
    NFp = sb_ref.shape[0]
    NFE = wb_ref.shape[2]

    rh1 = rh1_ref[...]
    rw1t = rw1t_ref[...]
    sb = sb_ref[...]
    rh2 = rh2_ref[...]
    rw2t = rw2t_ref[...]

    for q in range(Q):
        emb = jnp.zeros((NFp, NFE), jnp.float32)
        for c in range(C):
            xr = x_ref[c * Q + q]                                                 # (H, W)
            t0 = jnp.dot(rh1, xr, preferred_element_type=jnp.float32)             # (S, W)
            y = jnp.dot(t0, rw1t, preferred_element_type=jnp.float32)             # (S, S)
            t1 = jnp.dot(y, wb_ref[c], preferred_element_type=jnp.float32)        # (S, NF*E)
            emb = emb + jnp.dot(sb, t1 * wa_ref[c],
                                preferred_element_type=jnp.float32)               # (NF, NF*E)
        h = jax.nn.gelu(emb + b1_ref[...])                                        # (NF, NF*E)
        lq = jnp.dot(h, wfs_ref[...], preferred_element_type=jnp.float32)         # (NF, NF)
        m1 = jnp.dot(lq, rw2t, preferred_element_type=jnp.float32)                # (NF, tw)
        up = jnp.dot(rh2, m1, preferred_element_type=jnp.float32) + bf_ref[...]   # (th, tw)
        logit_ref[q] = up
        mask_ref[q] = jax.nn.sigmoid(up)   # EUP epilogue, free under the matmuls


def _full_spec(shape):
    n = len(shape)
    return pl.BlockSpec(shape, lambda: (0,) * n)


# ---------------- forward pass ----------------
@functools.partial(jax.jit, static_argnums=(2, 3))
def _forward_impl(params, query_images, target_h, target_w):
    HI = jax.lax.Precision.HIGHEST
    Q, C, H, W = query_images.shape
    x = query_images.astype(jnp.float32)

    # --- scale heuristic hoisted out of the kernel (per review) ---
    if query_images.dtype == jnp.uint8:
        mul = jnp.float32(1.0)
    else:
        mul = jnp.where(jnp.max(x) <= 1.0, jnp.float32(255.0), jnp.float32(1.0))
    inv_std = _np_f32(1.0 / PIXEL_STD)                     # (3,)
    s_c = mul * inv_std                                    # (3,)  traced scale
    b_c = _np_f32(-PIXEL_MEAN / PIXEL_STD)                 # (3,)  constant offset

    # rows ordered (channel, query): tiny 6 KiB transpose, everything downstream
    # stays in VMEM inside the single fused kernel.
    x_cq = jnp.transpose(x, (1, 0, 2, 3)).reshape(C * Q, H, W)

    # --- static separable resize operators (tiny) ---
    rh1 = _np_f32(_resize_matrix_np(H, IMAGE_SIZE))                    # (S, H)
    rw1t = _np_f32(_resize_matrix_np(W, IMAGE_SIZE).T)                 # (W, S)
    sb = _np_f32(np.kron(np.eye(NF), np.ones((1, PATCH))))             # (NF, S)
    r_up = _resize_matrix_np(NF, 4 * NF)                               # (4NF, NF)
    rh2 = _np_f32(_resize_matrix_np(4 * NF, target_h) @ r_up)          # (th, NF)
    rw2t = _np_f32((_resize_matrix_np(4 * NF, target_w) @ r_up).T)     # (NF, tw)

    # --- parameter folds / expansions (tiny, fused by XLA under jit) ---
    wa, wb = params["enc_wa"], params["enc_wb"]                        # (3, P, E)
    eye_nf = jnp.eye(NF, dtype=jnp.float32)
    # block-diag-in-pw width factor: wb_bd[c, pw*P+j, pw*E+e] = wb[c, j, e]
    wb_bd = jnp.einsum("ab,cje->cajbe", eye_nf, wb).reshape(C, IMAGE_SIZE, NF * EMBED)
    # tiled height factor with the per-channel normalization scale folded in:
    wa_exp = jnp.tile(wa, (1, NF, NF)) * s_c[:, None, None]            # (3, S, NF*E)
    # normalization offset term folded into the encoder bias (resize rows sum to 1):
    row_c = jnp.sum(wb, axis=1) * jnp.sum(wa, axis=1)                  # (3, E)
    offset = jnp.sum(b_c[:, None] * row_c, axis=0)                     # (E,)
    b1_eff = jnp.tile(params["enc_b1"] + offset[None, :], (1, NF))     # (1, NF*E)
    # folded no-prompt mask-decoder head (precomputed in wrapper, per review):
    wf = jnp.matmul(params["enc_w2"], params["dec_w"], precision=HI)   # (E, 1)
    wfs = jnp.einsum("ab,eo->aebo", eye_nf, wf).reshape(NF * EMBED, NF)
    bf = jnp.matmul(params["enc_b2"] + params["no_mask_embed"], params["dec_w"],
                    precision=HI) + params["dec_b"]                    # (1, 1)

    operands = (x_cq, rh1, rw1t, wb_bd, wa_exp, sb, b1_eff, wfs, bf, rh2, rw2t)
    logits, masks = pl.pallas_call(
        _fused_sam_kernel,
        out_shape=(jax.ShapeDtypeStruct((Q, target_h, target_w), jnp.float32),
                   jax.ShapeDtypeStruct((Q, target_h, target_w), jnp.float32)),
        in_specs=[_full_spec(op.shape) for op in operands],
        out_specs=(_full_spec((Q, target_h, target_w)),
                   _full_spec((Q, target_h, target_w))),
    )(*operands)

    logits = logits.reshape(Q, 1, target_h, target_w)
    masks = masks.reshape(Q, 1, target_h, target_w)
    return {"masks": masks, "logits": logits}


def baseline_sam_forward(params, query_images, query_masks=None, use_gt_box=False):
    # TODO(synk): use_gt_box / get_bbox_from_mask box-prompt branch not implemented
    # (data-dependent nonzero extraction + box prompt encoder).
    if query_masks is not None:
        target_h, target_w = int(query_masks.shape[-2]), int(query_masks.shape[-1])
    else:
        target_h, target_w = IMAGE_SIZE, IMAGE_SIZE
    return _forward_impl(params, query_images, target_h, target_w)


# ---------------- pure-JAX reference (for in-script correctness check) ----------------
def _reference_forward(params, query_images, target_h, target_w):
    HI = jax.lax.Precision.HIGHEST
    Q, C, H, W = query_images.shape
    x = query_images.astype(jnp.float32)
    if query_images.dtype == jnp.uint8:
        mul = jnp.float32(1.0)
    else:
        mul = jnp.where(jnp.max(x) <= 1.0, jnp.float32(255.0), jnp.float32(1.0))
    mean = _np_f32(PIXEL_MEAN).reshape(1, 3, 1, 1)
    std = _np_f32(PIXEL_STD).reshape(1, 3, 1, 1)
    xn = (x * mul - mean) / std
    Rh = _np_f32(_resize_matrix_np(H, IMAGE_SIZE))
    Rw = _np_f32(_resize_matrix_np(W, IMAGE_SIZE))
    y = jnp.einsum("ah,qchw,bw->qcab", Rh, xn, Rw, precision=HI)        # (Q,C,S,S)
    p = y.reshape(Q, C, NF, PATCH, NF, PATCH).transpose(0, 1, 2, 4, 3, 5)
    emb = jnp.einsum("qcuvij,cie,cje->quve", p, params["enc_wa"], params["enc_wb"],
                     precision=HI)                                      # (Q,NF,NF,E)
    h = jax.nn.gelu(emb + params["enc_b1"].reshape(1, 1, 1, EMBED))
    wf = jnp.matmul(params["enc_w2"], params["dec_w"], precision=HI)
    bf = jnp.matmul(params["enc_b2"] + params["no_mask_embed"], params["dec_w"],
                    precision=HI) + params["dec_b"]
    lq = jnp.einsum("quve,e->quv", h, wf[:, 0], precision=HI)           # (Q,NF,NF)
    r_up = _resize_matrix_np(NF, 4 * NF)
    Rh2 = _np_f32(_resize_matrix_np(4 * NF, target_h) @ r_up)
    Rw2 = _np_f32(_resize_matrix_np(4 * NF, target_w) @ r_up)
    logits = jnp.einsum("au,quv,bv->qab", Rh2, lq, Rw2, precision=HI) + bf[0, 0]
    logits = logits.reshape(Q, 1, target_h, target_w)
    return {"masks": jax.nn.sigmoid(logits), "logits": logits}


# ---------------- deterministic parameter init ----------------
def init_params(key):
    ks = jax.random.split(key, 6)
    return {
        # separable synthetic patch-embed: w1[c,i,j,e] = wa[c,i,e] * wb[c,j,e]
        "enc_wa": 0.15 * jax.random.normal(ks[0], (3, PATCH, EMBED), jnp.float32),
        "enc_wb": 0.15 * jax.random.normal(ks[1], (3, PATCH, EMBED), jnp.float32),
        "enc_b1": jnp.zeros((1, EMBED), jnp.float32),
        "enc_w2": 0.1 * jax.random.normal(ks[2], (EMBED, EMBED), jnp.float32),
        "enc_b2": jnp.zeros((1, EMBED), jnp.float32),
        "no_mask_embed": 0.1 * jax.random.normal(ks[3], (1, EMBED), jnp.float32),
        "dec_w": 0.2 * jax.random.normal(ks[4], (EMBED, 1), jnp.float32),
        "dec_b": jnp.zeros((1, 1), jnp.float32),
    }


if __name__ == "__main__":
    key = jax.random.PRNGKey(0)
    kp, kx, km = jax.random.split(key, 3)
    params = init_params(kp)

    Q, H, W = 2, 16, 16
    query_images = jax.random.uniform(kx, (Q, 3, H, W), jnp.float32)          # [0,1)
    query_masks = (jax.random.uniform(km, (Q, 1, H, W)) > 0.5).astype(jnp.float32)

    out = baseline_sam_forward(params, query_images, query_masks)
    jax.block_until_ready(out)

    assert out["logits"].shape == (Q, 1, H, W), out["logits"].shape
    assert out["masks"].shape == (Q, 1, H, W), out["masks"].shape
    assert bool(jnp.all(jnp.isfinite(out["logits"])))
    assert bool(jnp.all((out["masks"] >= 0.0) & (out["masks"] <= 1.0)))

    # correctness check against a pure-JAX reference of the same (synthetic) forward
    ref = _reference_forward(params, query_images, H, W)
    err = float(jnp.max(jnp.abs(out["logits"] - ref["logits"])))
    assert err < 5e-2, f"logits mismatch vs reference: {err}"

    print("KERNEL_OK")
</pallas_src>

<mosaic_0001>
module attributes {stable_mosaic.version = 11 : i64} {
  func.func @_fused_sam_kernel(%arg0: memref<6x16x16xf32, #tpu.memory_space<vmem>>, %arg1: memref<64x16xf32, #tpu.memory_space<vmem>>, %arg2: memref<16x64xf32, #tpu.memory_space<vmem>>, %arg3: memref<3x64x128xf32, #tpu.memory_space<vmem>>, %arg4: memref<3x64x128xf32, #tpu.memory_space<vmem>>, %arg5: memref<4x64xf32, #tpu.memory_space<vmem>>, %arg6: memref<1x128xf32, #tpu.memory_space<vmem>>, %arg7: memref<128x4xf32, #tpu.memory_space<vmem>>, %arg8: memref<1x1xf32, #tpu.memory_space<vmem>>, %arg9: memref<16x4xf32, #tpu.memory_space<vmem>>, %arg10: memref<4x16xf32, #tpu.memory_space<vmem>>, %arg11: memref<2x16x16xf32, #tpu.memory_space<vmem>>, %arg12: memref<2x16x16xf32, #tpu.memory_space<vmem>>) attributes {dimension_semantics = [], scalar_prefetch = 0 : i64, scratch_operands = 0 : i64, tpu.core_type = #tpu.core_type<tc>} {
    %c0 = arith.constant 0 : index
    %c0_0 = arith.constant 0 : index
    %0 = vector.load %arg1[%c0, %c0_0] : memref<64x16xf32, #tpu.memory_space<vmem>>, vector<64x16xf32>
    %c0_1 = arith.constant 0 : index
    %c0_2 = arith.constant 0 : index
    %1 = vector.load %arg2[%c0_1, %c0_2] : memref<16x64xf32, #tpu.memory_space<vmem>>, vector<16x64xf32>
    %c0_3 = arith.constant 0 : index
    %c0_4 = arith.constant 0 : index
    %2 = vector.load %arg5[%c0_3, %c0_4] : memref<4x64xf32, #tpu.memory_space<vmem>>, vector<4x64xf32>
    %c0_5 = arith.constant 0 : index
    %c0_6 = arith.constant 0 : index
    %3 = vector.load %arg9[%c0_5, %c0_6] : memref<16x4xf32, #tpu.memory_space<vmem>>, vector<16x4xf32>
    %c0_7 = arith.constant 0 : index
    %c0_8 = arith.constant 0 : index
    %4 = vector.load %arg10[%c0_7, %c0_8] : memref<4x16xf32, #tpu.memory_space<vmem>>, vector<4x16xf32>
    %cst = arith.constant 0.000000e+00 : f32
    %5 = vector.broadcast %cst : f32 to vector<4x128xf32>
    %c0_9 = arith.constant 0 : index
    %c0_10 = arith.constant 0 : index
    %c0_11 = arith.constant 0 : index
    %6 = vector.load %arg0[%c0_9, %c0_10, %c0_11] : memref<6x16x16xf32, #tpu.memory_space<vmem>>, vector<1x16x16xf32>
    %7 = vector.shape_cast %6 : vector<1x16x16xf32> to vector<16x16xf32>
    %cst_12 = arith.constant dense<0.000000e+00> : vector<64x16xf32>
    %8 = tpu.matmul %0, %7, %cst_12 {dimension_numbers = #tpu.dot_dimension_numbers<[1], [0], [0], [1], [0, 0, 1, 1], [], []>} : vector<64x16xf32>, vector<16x16xf32>, vector<64x16xf32> -> vector<64x16xf32>
    %cst_13 = arith.constant dense<0.000000e+00> : vector<64x64xf32>
    %9 = tpu.matmul %8, %1, %cst_13 {dimension_numbers = #tpu.dot_dimension_numbers<[1], [0], [0], [1], [0, 0, 1, 1], [], []>} : vector<64x16xf32>, vector<16x64xf32>, vector<64x64xf32> -> vector<64x64xf32>
    %c0_14 = arith.constant 0 : index
    %c0_15 = arith.constant 0 : index
    %c0_16 = arith.constant 0 : index
    %10 = vector.load %arg3[%c0_14, %c0_15, %c0_16] : memref<3x64x128xf32, #tpu.memory_space<vmem>>, vector<1x64x128xf32>
    %11 = vector.shape_cast %10 : vector<1x64x128xf32> to vector<64x128xf32>
    %cst_17 = arith.constant dense<0.000000e+00> : vector<64x128xf32>
    %12 = tpu.matmul %9, %11, %cst_17 {dimension_numbers = #tpu.dot_dimension_numbers<[1], [0], [0], [1], [0, 0, 1, 1], [], []>} : vector<64x64xf32>, vector<64x128xf32>, vector<64x128xf32> -> vector<64x128xf32>
    %c0_18 = arith.constant 0 : index
    %c0_19 = arith.constant 0 : index
    %c0_20 = arith.constant 0 : index
    %13 = vector.load %arg4[%c0_18, %c0_19, %c0_20] : memref<3x64x128xf32, #tpu.memory_space<vmem>>, vector<1x64x128xf32>
    %14 = vector.shape_cast %13 : vector<1x64x128xf32> to vector<64x128xf32>
    %15 = arith.mulf %12, %14 : vector<64x128xf32>
    %cst_21 = arith.constant dense<0.000000e+00> : vector<4x128xf32>
    %16 = tpu.matmul %2, %15, %cst_21 {dimension_numbers = #tpu.dot_dimension_numbers<[1], [0], [0], [1], [0, 0, 1, 1], [], []>} : vector<4x64xf32>, vector<64x128xf32>, vector<4x128xf32> -> vector<4x128xf32>
    %17 = arith.addf %5, %16 : vector<4x128xf32>
    %c2 = arith.constant 2 : index
    %c0_22 = arith.constant 0 : index
    %c0_23 = arith.constant 0 : index
    %18 = vector.load %arg0[%c2, %c0_22, %c0_23] : memref<6x16x16xf32, #tpu.memory_space<vmem>>, vector<1x16x16xf32>
    %19 = vector.shape_cast %18 : vector<1x16x16xf32> to vector<16x16xf32>
    %cst_24 = arith.constant dense<0.000000e+00> : vector<64x16xf32>
    %20 = tpu.matmul %0, %19, %cst_24 {dimension_numbers = #tpu.dot_dimension_numbers<[1], [0], [0], [1], [0, 0, 1, 1], [], []>} : vector<64x16xf32>, vector<16x16xf32>, vector<64x16xf32> -> vector<64x16xf32>
    %cst_25 = arith.constant dense<0.000000e+00> : vector<64x64xf32>
    %21 = tpu.matmul %20, %1, %cst_25 {dimension_numbers = #tpu.dot_dimension_numbers<[1], [0], [0], [1], [0, 0, 1, 1], [], []>} : vector<64x16xf32>, vector<16x64xf32>, vector<64x64xf32> -> vector<64x64xf32>
    %c1 = arith.constant 1 : index
    %c0_26 = arith.constant 0 : index
    %c0_27 = arith.constant 0 : index
    %22 = vector.load %arg3[%c1, %c0_26, %c0_27] : memref<3x64x128xf32, #tpu.memory_space<vmem>>, vector<1x64x128xf32>
    %23 = vector.shape_cast %22 : vector<1x64x128xf32> to vector<64x128xf32>
    %cst_28 = arith.constant dense<0.000000e+00> : vector<64x128xf32>
    %24 = tpu.matmul %21, %23, %cst_28 {dimension_numbers = #tpu.dot_dimension_numbers<[1], [0], [0], [1], [0, 0, 1, 1], [], []>} : vector<64x64xf32>, vector<64x128xf32>, vector<64x128xf32> -> vector<64x128xf32>
    %c1_29 = arith.constant 1 : index
    %c0_30 = arith.constant 0 : index
    %c0_31 = arith.constant 0 : index
    %25 = vector.load %arg4[%c1_29, %c0_30, %c0_31] : memref<3x64x128xf32, #tpu.memory_space<vmem>>, vector<1x64x128xf32>
    %26 = vector.shape_cast %25 : vector<1x64x128xf32> to vector<64x128xf32>
    %27 = arith.mulf %24, %26 : vector<64x128xf32>
    %cst_32 = arith.constant dense<0.000000e+00> : vector<4x128xf32>
    %28 = tpu.matmul %2, %27, %cst_32 {dimension_numbers = #tpu.dot_dimension_numbers<[1], [0], [0], [1], [0, 0, 1, 1], [], []>} : vector<4x64xf32>, vector<64x128xf32>, vector<4x128xf32> -> vector<4x128xf32>
    %29 = arith.addf %17, %28 : vector<4x128xf32>
    %c4 = arith.constant 4 : index
    %c0_33 = arith.constant 0 : index
    %c0_34 = arith.constant 0 : index
    %30 = vector.load %arg0[%c4, %c0_33, %c0_34] : memref<6x16x16xf32, #tpu.memory_space<vmem>>, vector<1x16x16xf32>
    %31 = vector.shape_cast %30 : vector<1x16x16xf32> to vector<16x16xf32>
    %cst_35 = arith.constant dense<0.000000e+00> : vector<64x16xf32>
    %32 = tpu.matmul %0, %31, %cst_35 {dimension_numbers = #tpu.dot_dimension_numbers<[1], [0], [0], [1], [0, 0, 1, 1], [], []>} : vector<64x16xf32>, vector<16x16xf32>, vector<64x16xf32> -> vector<64x16xf32>
    %cst_36 = arith.constant dense<0.000000e+00> : vector<64x64xf32>
    %33 = tpu.matmul %32, %1, %cst_36 {dimension_numbers = #tpu.dot_dimension_numbers<[1], [0], [0], [1], [0, 0, 1, 1], [], []>} : vector<64x16xf32>, vector<16x64xf32>, vector<64x64xf32> -> vector<64x64xf32>
    %c2_37 = arith.constant 2 : index
    %c0_38 = arith.constant 0 : index
    %c0_39 = arith.constant 0 : index
    %34 = vector.load %arg3[%c2_37, %c0_38, %c0_39] : memref<3x64x128xf32, #tpu.memory_space<vmem>>, vector<1x64x128xf32>
    %35 = vector.shape_cast %34 : vector<1x64x128xf32> to vector<64x128xf32>
    %cst_40 = arith.constant dense<0.000000e+00> : vector<64x128xf32>
    %36 = tpu.matmul %33, %35, %cst_40 {dimension_numbers = #tpu.dot_dimension_numbers<[1], [0], [0], [1], [0, 0, 1, 1], [], []>} : vector<64x64xf32>, vector<64x128xf32>, vector<64x128xf32> -> vector<64x128xf32>
    %c2_41 = arith.constant 2 : index
    %c0_42 = arith.constant 0 : index
    %c0_43 = arith.constant 0 : index
    %37 = vector.load %arg4[%c2_41, %c0_42, %c0_43] : memref<3x64x128xf32, #tpu.memory_space<vmem>>, vector<1x64x128xf32>
    %38 = vector.shape_cast %37 : vector<1x64x128xf32> to vector<64x128xf32>
    %39 = arith.mulf %36, %38 : vector<64x128xf32>
    %cst_44 = arith.constant dense<0.000000e+00> : vector<4x128xf32>
    %40 = tpu.matmul %2, %39, %cst_44 {dimension_numbers = #tpu.dot_dimension_numbers<[1], [0], [0], [1], [0, 0, 1, 1], [], []>} : vector<4x64xf32>, vector<64x128xf32>, vector<4x128xf32> -> vector<4x128xf32>
    %41 = arith.addf %29, %40 : vector<4x128xf32>
    %c0_45 = arith.constant 0 : index
    %c0_46 = arith.constant 0 : index
    %42 = vector.load %arg6[%c0_45, %c0_46] : memref<1x128xf32, #tpu.memory_space<vmem>>, vector<1x128xf32>
    %43 = vector.broadcast %42 : vector<1x128xf32> to vector<4x128xf32>
    %44 = arith.addf %41, %43 : vector<4x128xf32>
    %45 = arith.mulf %44, %44 : vector<4x128xf32>
    %46 = arith.mulf %44, %45 : vector<4x128xf32>
    %cst_47 = arith.constant 4.471500e-02 : f32
    %47 = vector.broadcast %cst_47 : f32 to vector<4x128xf32>
    %48 = arith.mulf %47, %46 : vector<4x128xf32>
    %49 = arith.addf %44, %48 : vector<4x128xf32>
    %cst_48 = arith.constant 0.797884583 : f32
    %50 = vector.broadcast %cst_48 : f32 to vector<4x128xf32>
    %51 = arith.mulf %50, %49 : vector<4x128xf32>
    %52 = math.tanh %51 : vector<4x128xf32>
    %cst_49 = arith.constant 1.000000e+00 : f32
    %53 = vector.broadcast %cst_49 : f32 to vector<4x128xf32>
    %54 = arith.addf %53, %52 : vector<4x128xf32>
    %cst_50 = arith.constant 5.000000e-01 : f32
    %55 = vector.broadcast %cst_50 : f32 to vector<4x128xf32>
    %56 = arith.mulf %55, %54 : vector<4x128xf32>
    %57 = arith.mulf %44, %56 : vector<4x128xf32>
    %c0_51 = arith.constant 0 : index
    %c0_52 = arith.constant 0 : index
    %58 = vector.load %arg7[%c0_51, %c0_52] : memref<128x4xf32, #tpu.memory_space<vmem>>, vector<128x4xf32>
    %cst_53 = arith.constant dense<0.000000e+00> : vector<4x4xf32>
    %59 = tpu.matmul %57, %58, %cst_53 {dimension_numbers = #tpu.dot_dimension_numbers<[1], [0], [0], [1], [0, 0, 1, 1], [], []>} : vector<4x128xf32>, vector<128x4xf32>, vector<4x4xf32> -> vector<4x4xf32>
    %cst_54 = arith.constant dense<0.000000e+00> : vector<4x16xf32>
    %60 = tpu.matmul %59, %4, %cst_54 {dimension_numbers = #tpu.dot_dimension_numbers<[1], [0], [0], [1], [0, 0, 1, 1], [], []>} : vector<4x4xf32>, vector<4x16xf32>, vector<4x16xf32> -> vector<4x16xf32>
    %cst_55 = arith.constant dense<0.000000e+00> : vector<16x16xf32>
    %61 = tpu.matmul %3, %60, %cst_55 {dimension_numbers = #tpu.dot_dimension_numbers<[1], [0], [0], [1], [0, 0, 1, 1], [], []>} : vector<16x4xf32>, vector<4x16xf32>, vector<16x16xf32> -> vector<16x16xf32>
    %c0_56 = arith.constant 0 : index
    %c0_57 = arith.constant 0 : index
    %62 = vector.load %arg8[%c0_56, %c0_57] : memref<1x1xf32, #tpu.memory_space<vmem>>, vector<1x1xf32>
    %63 = vector.broadcast %62 : vector<1x1xf32> to vector<16x16xf32>
    %64 = arith.addf %61, %63 : vector<16x16xf32>
    %c0_58 = arith.constant 0 : index
    %c0_59 = arith.constant 0 : index
    %c0_60 = arith.constant 0 : index
    %65 = vector.load %arg11[%c0_58, %c0_59, %c0_60] : memref<2x16x16xf32, #tpu.memory_space<vmem>>, vector<1x16x16xf32>
    %66 = vector.shape_cast %65 : vector<1x16x16xf32> to vector<16x16xf32>
    %67 = vector.shape_cast %64 : vector<16x16xf32> to vector<1x16x16xf32>
    tpu.vector_store %arg11[%c0_58, %c0_59, %c0_60], %67 {strides = array<i32>} : memref<2x16x16xf32, #tpu.memory_space<vmem>>, vector<1x16x16xf32>,
    %68 = arith.negf %64 : vector<16x16xf32>
    %69 = math.exp %68 : vector<16x16xf32>
    %cst_61 = arith.constant 1.000000e+00 : f32
    %70 = vector.broadcast %cst_61 : f32 to vector<16x16xf32>
    %71 = arith.addf %70, %69 : vector<16x16xf32>
    %72 = arith.divf %70, %71 : vector<16x16xf32>
    %c0_62 = arith.constant 0 : index
    %c0_63 = arith.constant 0 : index
    %c0_64 = arith.constant 0 : index
    %73 = vector.load %arg12[%c0_62, %c0_63, %c0_64] : memref<2x16x16xf32, #tpu.memory_space<vmem>>, vector<1x16x16xf32>
    %74 = vector.shape_cast %73 : vector<1x16x16xf32> to vector<16x16xf32>
    %75 = vector.shape_cast %72 : vector<16x16xf32> to vector<1x16x16xf32>
    tpu.vector_store %arg12[%c0_62, %c0_63, %c0_64], %75 {strides = array<i32>} : memref<2x16x16xf32, #tpu.memory_space<vmem>>, vector<1x16x16xf32>,
    %cst_65 = arith.constant 0.000000e+00 : f32
    %76 = vector.broadcast %cst_65 : f32 to vector<4x128xf32>
    %c1_66 = arith.constant 1 : index
    %c0_67 = arith.constant 0 : index
    %c0_68 = arith.constant 0 : index
    %77 = vector.load %arg0[%c1_66, %c0_67, %c0_68] : memref<6x16x16xf32, #tpu.memory_space<vmem>>, vector<1x16x16xf32>
    %78 = vector.shape_cast %77 : vector<1x16x16xf32> to vector<16x16xf32>
    %cst_69 = arith.constant dense<0.000000e+00> : vector<64x16xf32>
    %79 = tpu.matmul %0, %78, %cst_69 {dimension_numbers = #tpu.dot_dimension_numbers<[1], [0], [0], [1], [0, 0, 1, 1], [], []>} : vector<64x16xf32>, vector<16x16xf32>, vector<64x16xf32> -> vector<64x16xf32>
    %cst_70 = arith.constant dense<0.000000e+00> : vector<64x64xf32>
    %80 = tpu.matmul %79, %1, %cst_70 {dimension_numbers = #tpu.dot_dimension_numbers<[1], [0], [0], [1], [0, 0, 1, 1], [], []>} : vector<64x16xf32>, vector<16x64xf32>, vector<64x64xf32> -> vector<64x64xf32>
    %c0_71 = arith.constant 0 : index
    %c0_72 = arith.constant 0 : index
    %c0_73 = arith.constant 0 : index
    %81 = vector.load %arg3[%c0_71, %c0_72, %c0_73] : memref<3x64x128xf32, #tpu.memory_space<vmem>>, vector<1x64x128xf32>
    %82 = vector.shape_cast %81 : vector<1x64x128xf32> to vector<64x128xf32>
    %cst_74 = arith.constant dense<0.000000e+00> : vector<64x128xf32>
    %83 = tpu.matmul %80, %82, %cst_74 {dimension_numbers = #tpu.dot_dimension_numbers<[1], [0], [0], [1], [0, 0, 1, 1], [], []>} : vector<64x64xf32>, vector<64x128xf32>, vector<64x128xf32> -> vector<64x128xf32>
    %c0_75 = arith.constant 0 : index
    %c0_76 = arith.constant 0 : index
    %c0_77 = arith.constant 0 : index
    %84 = vector.load %arg4[%c0_75, %c0_76, %c0_77] : memref<3x64x128xf32, #tpu.memory_space<vmem>>, vector<1x64x128xf32>
    %85 = vector.shape_cast %84 : vector<1x64x128xf32> to vector<64x128xf32>
    %86 = arith.mulf %83, %85 : vector<64x128xf32>
    %cst_78 = arith.constant dense<0.000000e+00> : vector<4x128xf32>
    %87 = tpu.matmul %2, %86, %cst_78 {dimension_numbers = #tpu.dot_dimension_numbers<[1], [0], [0], [1], [0, 0, 1, 1], [], []>} : vector<4x64xf32>, vector<64x128xf32>, vector<4x128xf32> -> vector<4x128xf32>
    %88 = arith.addf %76, %87 : vector<4x128xf32>
    %c3 = arith.constant 3 : index
    %c0_79 = arith.constant 0 : index
    %c0_80 = arith.constant 0 : index
    %89 = vector.load %arg0[%c3, %c0_79, %c0_80] : memref<6x16x16xf32, #tpu.memory_space<vmem>>, vector<1x16x16xf32>
    %90 = vector.shape_cast %89 : vector<1x16x16xf32> to vector<16x16xf32>
    %cst_81 = arith.constant dense<0.000000e+00> : vector<64x16xf32>
    %91 = tpu.matmul %0, %90, %cst_81 {dimension_numbers = #tpu.dot_dimension_numbers<[1], [0], [0], [1], [0, 0, 1, 1], [], []>} : vector<64x16xf32>, vector<16x16xf32>, vector<64x16xf32> -> vector<64x16xf32>
    %cst_82 = arith.constant dense<0.000000e+00> : vector<64x64xf32>
    %92 = tpu.matmul %91, %1, %cst_82 {dimension_numbers = #tpu.dot_dimension_numbers<[1], [0], [0], [1], [0, 0, 1, 1], [], []>} : vector<64x16xf32>, vector<16x64xf32>, vector<64x64xf32> -> vector<64x64xf32>
    %c1_83 = arith.constant 1 : index
    %c0_84 = arith.constant 0 : index
    %c0_85 = arith.constant 0 : index
    %93 = vector.load %arg3[%c1_83, %c0_84, %c0_85] : memref<3x64x128xf32, #tpu.memory_space<vmem>>, vector<1x64x128xf32>
    %94 = vector.shape_cast %93 : vector<1x64x128xf32> to vector<64x128xf32>
    %cst_86 = arith.constant dense<0.000000e+00> : vector<64x128xf32>
    %95 = tpu.matmul %92, %94, %cst_86 {dimension_numbers = #tpu.dot_dimension_numbers<[1], [0], [0], [1], [0, 0, 1, 1], [], []>} : vector<64x64xf32>, vector<64x128xf32>, vector<64x128xf32> -> vector<64x128xf32>
    %c1_87 = arith.constant 1 : index
    %c0_88 = arith.constant 0 : index
    %c0_89 = arith.constant 0 : index
    %96 = vector.load %arg4[%c1_87, %c0_88, %c0_89] : memref<3x64x128xf32, #tpu.memory_space<vmem>>, vector<1x64x128xf32>
    %97 = vector.shape_cast %96 : vector<1x64x128xf32> to vector<64x128xf32>
    %98 = arith.mulf %95, %97 : vector<64x128xf32>
    %cst_90 = arith.constant dense<0.000000e+00> : vector<4x128xf32>
    %99 = tpu.matmul %2, %98, %cst_90 {dimension_numbers = #tpu.dot_dimension_numbers<[1], [0], [0], [1], [0, 0, 1, 1], [], []>} : vector<4x64xf32>, vector<64x128xf32>, vector<4x128xf32> -> vector<4x128xf32>
    %100 = arith.addf %88, %99 : vector<4x128xf32>
    %c5 = arith.constant 5 : index
    %c0_91 = arith.constant 0 : index
    %c0_92 = arith.constant 0 : index
    %101 = vector.load %arg0[%c5, %c0_91, %c0_92] : memref<6x16x16xf32, #tpu.memory_space<vmem>>, vector<1x16x16xf32>
    %102 = vector.shape_cast %101 : vector<1x16x16xf32> to vector<16x16xf32>
    %cst_93 = arith.constant dense<0.000000e+00> : vector<64x16xf32>
    %103 = tpu.matmul %0, %102, %cst_93 {dimension_numbers = #tpu.dot_dimension_numbers<[1], [0], [0], [1], [0, 0, 1, 1], [], []>} : vector<64x16xf32>, vector<16x16xf32>, vector<64x16xf32> -> vector<64x16xf32>
    %cst_94 = arith.constant dense<0.000000e+00> : vector<64x64xf32>
    %104 = tpu.matmul %103, %1, %cst_94 {dimension_numbers = #tpu.dot_dimension_numbers<[1], [0], [0], [1], [0, 0, 1, 1], [], []>} : vector<64x16xf32>, vector<16x64xf32>, vector<64x64xf32> -> vector<64x64xf32>
    %c2_95 = arith.constant 2 : index
    %c0_96 = arith.constant 0 : index
    %c0_97 = arith.constant 0 : index
    %105 = vector.load %arg3[%c2_95, %c0_96, %c0_97] : memref<3x64x128xf32, #tpu.memory_space<vmem>>, vector<1x64x128xf32>
    %106 = vector.shape_cast %105 : vector<1x64x128xf32> to vector<64x128xf32>
    %cst_98 = arith.constant dense<0.000000e+00> : vector<64x128xf32>
    %107 = tpu.matmul %104, %106, %cst_98 {dimension_numbers = #tpu.dot_dimension_numbers<[1], [0], [0], [1], [0, 0, 1, 1], [], []>} : vector<64x64xf32>, vector<64x128xf32>, vector<64x128xf32> -> vector<64x128xf32>
    %c2_99 = arith.constant 2 : index
    %c0_100 = arith.constant 0 : index
    %c0_101 = arith.constant 0 : index
    %108 = vector.load %arg4[%c2_99, %c0_100, %c0_101] : memref<3x64x128xf32, #tpu.memory_space<vmem>>, vector<1x64x128xf32>
    %109 = vector.shape_cast %108 : vector<1x64x128xf32> to vector<64x128xf32>
    %110 = arith.mulf %107, %109 : vector<64x128xf32>
    %cst_102 = arith.constant dense<0.000000e+00> : vector<4x128xf32>
    %111 = tpu.matmul %2, %110, %cst_102 {dimension_numbers = #tpu.dot_dimension_numbers<[1], [0], [0], [1], [0, 0, 1, 1], [], []>} : vector<4x64xf32>, vector<64x128xf32>, vector<4x128xf32> -> vector<4x128xf32>
    %112 = arith.addf %100, %111 : vector<4x128xf32>
    %c0_103 = arith.constant 0 : index
    %c0_104 = arith.constant 0 : index
    %113 = vector.load %arg6[%c0_103, %c0_104] : memref<1x128xf32, #tpu.memory_space<vmem>>, vector<1x128xf32>
    %114 = vector.broadcast %113 : vector<1x128xf32> to vector<4x128xf32>
    %115 = arith.addf %112, %114 : vector<4x128xf32>
    %116 = arith.mulf %115, %115 : vector<4x128xf32>
    %117 = arith.mulf %115, %116 : vector<4x128xf32>
    %cst_105 = arith.constant 4.471500e-02 : f32
    %118 = vector.broadcast %cst_105 : f32 to vector<4x128xf32>
    %119 = arith.mulf %118, %117 : vector<4x128xf32>
    %120 = arith.addf %115, %119 : vector<4x128xf32>
    %cst_106 = arith.constant 0.797884583 : f32
    %121 = vector.broadcast %cst_106 : f32 to vector<4x128xf32>
    %122 = arith.mulf %121, %120 : vector<4x128xf32>
    %123 = math.tanh %122 : vector<4x128xf32>
    %cst_107 = arith.constant 1.000000e+00 : f32
    %124 = vector.broadcast %cst_107 : f32 to vector<4x128xf32>
    %125 = arith.addf %124, %123 : vector<4x128xf32>
    %cst_108 = arith.constant 5.000000e-01 : f32
    %126 = vector.broadcast %cst_108 : f32 to vector<4x128xf32>
    %127 = arith.mulf %126, %125 : vector<4x128xf32>
    %128 = arith.mulf %115, %127 : vector<4x128xf32>
    %c0_109 = arith.constant 0 : index
    %c0_110 = arith.constant 0 : index
    %129 = vector.load %arg7[%c0_109, %c0_110] : memref<128x4xf32, #tpu.memory_space<vmem>>, vector<128x4xf32>
    %cst_111 = arith.constant dense<0.000000e+00> : vector<4x4xf32>
    %130 = tpu.matmul %128, %129, %cst_111 {dimension_numbers = #tpu.dot_dimension_numbers<[1], [0], [0], [1], [0, 0, 1, 1], [], []>} : vector<4x128xf32>, vector<128x4xf32>, vector<4x4xf32> -> vector<4x4xf32>
    %cst_112 = arith.constant dense<0.000000e+00> : vector<4x16xf32>
    %131 = tpu.matmul %130, %4, %cst_112 {dimension_numbers = #tpu.dot_dimension_numbers<[1], [0], [0], [1], [0, 0, 1, 1], [], []>} : vector<4x4xf32>, vector<4x16xf32>, vector<4x16xf32> -> vector<4x16xf32>
    %cst_113 = arith.constant dense<0.000000e+00> : vector<16x16xf32>
    %132 = tpu.matmul %3, %131, %cst_113 {dimension_numbers = #tpu.dot_dimension_numbers<[1], [0], [0], [1], [0, 0, 1, 1], [], []>} : vector<16x4xf32>, vector<4x16xf32>, vector<16x16xf32> -> vector<16x16xf32>
    %c0_114 = arith.constant 0 : index
    %c0_115 = arith.constant 0 : index
    %133 = vector.load %arg8[%c0_114, %c0_115] : memref<1x1xf32, #tpu.memory_space<vmem>>, vector<1x1xf32>
    %134 = vector.broadcast %133 : vector<1x1xf32> to vector<16x16xf32>
    %135 = arith.addf %132, %134 : vector<16x16xf32>
    %c1_116 = arith.constant 1 : index
    %c0_117 = arith.constant 0 : index
    %c0_118 = arith.constant 0 : index
    %136 = vector.load %arg11[%c1_116, %c0_117, %c0_118] : memref<2x16x16xf32, #tpu.memory_space<vmem>>, vector<1x16x16xf32>
    %137 = vector.shape_cast %136 : vector<1x16x16xf32> to vector<16x16xf32>
    %138 = vector.shape_cast %135 : vector<16x16xf32> to vector<1x16x16xf32>
    tpu.vector_store %arg11[%c1_116, %c0_117, %c0_118], %138 {strides = array<i32>} : memref<2x16x16xf32, #tpu.memory_space<vmem>>, vector<1x16x16xf32>,
    %139 = arith.negf %135 : vector<16x16xf32>
    %140 = math.exp %139 : vector<16x16xf32>
    %cst_119 = arith.constant 1.000000e+00 : f32
    %141 = vector.broadcast %cst_119 : f32 to vector<16x16xf32>
    %142 = arith.addf %141, %140 : vector<16x16xf32>
    %143 = arith.divf %141, %142 : vector<16x16xf32>
    %c1_120 = arith.constant 1 : index
    %c0_121 = arith.constant 0 : index
    %c0_122 = arith.constant 0 : index
    %144 = vector.load %arg12[%c1_120, %c0_121, %c0_122] : memref<2x16x16xf32, #tpu.memory_space<vmem>>, vector<1x16x16xf32>
    %145 = vector.shape_cast %144 : vector<1x16x16xf32> to vector<16x16xf32>
    %146 = vector.shape_cast %143 : vector<16x16xf32> to vector<1x16x16xf32>
    tpu.vector_store %arg12[%c1_120, %c0_121, %c0_122], %146 {strides = array<i32>} : memref<2x16x16xf32, #tpu.memory_space<vmem>>, vector<1x16x16xf32>,
    return
  }
}

</mosaic_0001>

<bundles_post_ra>
// kernel: _forward_impl.1
= control target key start
LH: loop header
LB: loop body
LE: loop exit
PB: predicated region body
PF: predicated region fallthrough
CT: control target
= control target key end

     0   :  { %s5880_s0 = inlined_call_operand.vmem [shape: f32[6,16,16], index: 0, kind: input, shape index: {}]   ;;  %s5881_s1 = inlined_call_operand.vmem [shape: f32[64,16], index: 1, kind: input, shape index: {}]   ;;  %s5882_s2 = inlined_call_operand.vmem [shape: f32[16,64], index: 2, kind: input, shape index: {}]   ;;  %s5883_s3 = inlined_call_operand.vmem [shape: f32[3,64,128], index: 3, kind: input, shape index: {}]   ;;  %s5884_s4 = inlined_call_operand.vmem [shape: f32[3,64,128], index: 4, kind: input, shape index: {}]   ;;  %s5885_s5 = inlined_call_operand.vmem [shape: f32[4,64], index: 5, kind: input, shape index: {}]   ;;  %s5886_s6 = inlined_call_operand.vmem [shape: f32[1,128], index: 6, kind: input, shape index: {}]   ;;  %s5887_s7 = inlined_call_operand.vmem [shape: f32[128,4], index: 7, kind: input, shape index: {}]   ;;  %s5888_s8 = inlined_call_operand.<no memory space> [shape: f32[1,1], index: 8, kind: input, shape index: {}]   ;;  %s5889_s9 = inlined_call_operand.vmem [shape: f32[16,4], index: 9, kind: input, shape index: {}]   ;;  %s5890_s10 = inlined_call_operand.vmem [shape: f32[4,16], index: 10, kind: input, shape index: {}]   ;;  %s5891_s11 = inlined_call_operand.hbm [shape: f32[2,16,16], index: 11, kind: output, shape index: {0}]   ;;  %s5892_s12 = inlined_call_operand.hbm [shape: f32[2,16,16], index: 12, kind: output, shape index: {1}]  }
   0x1   :  { %v18_v0 = vstv %s5888_s8 }
   0x2   :  { %19 = vst [vmem:[#allocation2] sm:$0x1] %v18_v0 }
   0x3   :  { %20 = vsyncpa [#allocation4], 0  ;;  %v58_v1 = vld [vmem:[%s5880_s0] sm:$0xff]  ;;  %v59_v2 = vld [vmem:[%s5880_s0 + $0x8] sm:$0xff]  ;;  %vm60_vm0 = vcmask 130048  }
   0x4   :  { %v5020_v3 = vld [vmem:[%s5881_s1] sm:$0xff]  ;;  %v4577_v4 = vpack.c.bf16 %v59_v2, %v58_v1  ;;  %v53_v6 = vld [vmem:[%s5882_s2 + $0x8] sm:$0xff] }
   0x5   :  { %4017 = vmatprep.mubr.msk.f32.mxu0 %vm60_vm0, %v5020_v3  ;;  %v52_v5 = vld [vmem:[%s5882_s2] sm:$0xff]  ;;  %v5033_v7 = vld [vmem:[%s5881_s1 + $0x8] sm:$0xff] }
   0x6   :  { %4578 = vmatprep.subr.bf16.mxu0 %v4577_v4  ;;  %v5035_v8 = vpack.c.bf16 %v53_v6, %v52_v5 }
   0x7   :  { %4580 = vmatpush3.bf16.msra.mxu0 %v4577_v4 }
   0x8   :  { %21 = vsyncpa [#allocation6], 0  ;;  %v5040_v9 = vld [vmem:[%s5881_s1 + $0x10] sm:$0xff]  ;;  %4582 = vmatprep.subr.bf16.mxu1 %v5035_v8  ;;  %v5051_v10 = vld [vmem:[%s5881_s1 + $0x18] sm:$0xff]  ;;  %vm327_vm1 = vcmask 523264   ;;  %vm4936_vm2 = vmmov 0  }
   0x9   :  { %4584 = vmatpush3.bf16.msra.mxu1 %v5035_v8  ;;  %v5056_v11 = vld [vmem:[%s5881_s1 + $0x20] sm:$0xff]  ;;  %v5065_v12 = vld [vmem:[%s5881_s1 + $0x28] sm:$0xff]  ;;  %v5070_v13 = vld [vmem:[%s5881_s1 + $0x30] sm:$0xff]  ;;  %vm1578_vm3 = vcmask 1043456   ;;  %vm1574_vm4 = vcmask 31744  }
   0xa   :  { %4018 = vmatmul.mubr.msk.f32.vlgmr.msra.gmra.mrb[0].mxu0 %vm60_vm0, %v5033_v7  ;;  %v5079_v14 = vld [vmem:[%s5881_s1 + $0x38] sm:$0xff]  ;;  %v319_v15 = vld [vmem:[%s5883_s3] sm:$0xff]  ;;  %v320_v16 = vld [vmem:[%s5883_s3 + $0x8] sm:$0xff] }
   0xb   :  { %4020 = vmatprep.mubr.msk.f32.mxu0 %vm60_vm0, %v5040_v9  ;;  %v321_v17 = vld [vmem:[%s5883_s3 + $0x10] sm:$0xff]  ;;  %v5092_v18 = vpack.c.bf16 %v320_v16, %v319_v15  ;;  %v322_v19 = vld [vmem:[%s5883_s3 + $0x18] sm:$0xff]  ;;  %v323_v21 = vld [vmem:[%s5883_s3 + $0x20] sm:$0xff] }
   0xc   :  { %v5097_v20 = vpack.c.bf16 %v322_v19, %v321_v17  ;;  %v324_v22 = vld [vmem:[%s5883_s3 + $0x28] sm:$0xff]  ;;  %v325_v24 = vld [vmem:[%s5883_s3 + $0x30] sm:$0xff]  ;;  %v326_v25 = vld [vmem:[%s5883_s3 + $0x38] sm:$0xff] }
   0xd   :  { %4586 = vmatprep.subr.bf16.mxu0 %v5092_v18  ;;  %4841 = vmatprep.subr.bf16.mxu1 %v5092_v18  ;;  %v5109_v23 = vpack.c.bf16 %v324_v22, %v323_v21  ;;  %v5119_v26 = vpack.c.bf16 %v326_v25, %v325_v24  ;;  %v3481_v35 = vld [vmem:[%s5880_s0 + $0x20] sm:$0xff]  ;;  %v3482_v36 = vld [vmem:[%s5880_s0 + $0x28] sm:$0xff]  ;;  %v3501_v48 = vld [vmem:[%s5883_s3 + $0x50] sm:$0xff] }
   0xe   :  { %4021 = vmatmul.mubr.msk.f32.gmra.mrb[2].mxu0 %vm60_vm0, %v5051_v10  ;;  %v4601_v37 = vpack.c.bf16 %v3482_v36, %v3481_v35  ;;  %v3499_v46 = vld [vmem:[%s5883_s3 + $0x40] sm:$0xff]  ;;  %v3500_v47 = vld [vmem:[%s5883_s3 + $0x48] sm:$0xff]  ;;  %v3502_v50 = vld [vmem:[%s5883_s3 + $0x58] sm:$0xff] }
   0xf   :  { %4023 = vmatprep.mubr.msk.f32.mxu0 %vm60_vm0, %v5056_v11  ;;  %4588 = vmatpush3.bf16.msra.mxu0 %v5092_v18  ;;  %v5180_v49 = vpack.c.bf16 %v3500_v47, %v3499_v46  ;;  %v5185_v51 = vpack.c.bf16 %v3502_v50, %v3501_v48  ;;  %v3503_v52 = vld [vmem:[%s5883_s3 + $0x60] sm:$0xff]  ;;  %v3504_v53 = vld [vmem:[%s5883_s3 + $0x68] sm:$0xff]  ;;  %v3505_v55 = vld [vmem:[%s5883_s3 + $0x70] sm:$0xff] }
  0x10   :  { %4590 = vmatprep.subr.bf16.mxu0 %v5097_v20  ;;  %v5196_v54 = vpack.c.bf16 %v3504_v53, %v3503_v52  ;;  %v3506_v56 = vld [vmem:[%s5883_s3 + $0x78] sm:$0xff]  ;;  %v5214_v58 = vld [vmem:[%s5884_s4 + $0x8] sm:$0xff]  ;;  %v5219_v59 = vld [vmem:[%s5884_s4] sm:$0xff] }
  0x11   :  { %v5206_v57 = vpack.c.bf16 %v3506_v56, %v3505_v55  ;;  %v5226_v0 = vld [vmem:[%s5884_s4 + $0x18] sm:$0xff]  ;;  %v5231_v1 = vld [vmem:[%s5884_s4 + $0x10] sm:$0xff]  ;;  %v5238_v16 = vld [vmem:[%s5884_s4 + $0x28] sm:$0xff]  ;;  %v5893_v56 = vmov 0.0  }
  0x12   :  { %4024 = vmatmul.mubr.msk.f32.gmra.mrb[4].mxu0 %vm60_vm0, %v5065_v12  ;;  %v5243_v17 = vld [vmem:[%s5884_s4 + $0x20] sm:$0xff] }
  0x13   :  { %4026 = vmatprep.mubr.msk.f32.mxu0 %vm60_vm0, %v5070_v13  ;;  %4592 = vmatpush3.bf16.msra.mxu0 %v5097_v20  ;;  %v5284_v55 = vld [vmem:[%s5885_s5] sm:$0xf] }
  0x14   :  { %4594 = vmatprep.subr.bf16.mxu0 %v5109_v23 }
  0x16   :  { %4027 = vmatmul.mubr.msk.f32.gmra.mrb[6].mxu0 %vm60_vm0, %v5079_v14 }
  0x17   :  { %4596 = vmatpush3.bf16.msra.mxu0 %v5109_v23 }
  0x18   :  { %4598 = vmatprep.subr.bf16.mxu0 %v5119_v26 }
  0x1b   :  { %4600 = vmatpush3.bf16.msra.mxu0 %v5119_v26 }
  0x1c   :  { %4606 = vmatprep.subr.bf16.mxu0 %v5035_v8 }
  0xdd   :  { %v4019_v27 = vpop.f32.mrb[0].mxu0 }
  0xde   :  { %v151_v28 = vpop.f32.mrb[1].mxu0 }
  0xdf   :  { %4033 = vmatprep.mubr.msk.f32.mxu1 %vm60_vm0, %v151_v28  ;;  %v5255_v28 = vld [vmem:[%s5884_s4 + $0x30] sm:$0xff] }
  0xe0   :  { %4034 = vmatmul.mubr.msk.f32.vlgmr.msra.gmra.mrb[0].mxu1 %vm60_vm0, %v4019_v27  ;;  %v5250_v27 = vld [vmem:[%s5884_s4 + $0x38] sm:$0xff] }
  0xe1   :  { %v4022_v29 = vpop.f32.mrb[2].mxu0  ;;  %4845 = vmatpush3.bf16.msra.mxu1 %v5092_v18 }
  0xe2   :  { %v161_v30 = vpop.f32.mrb[3].mxu0  ;;  %4842 = vmatprep.subr.bf16.mxu1 %v5097_v20 }
  0xe3   :  { %4036 = vmatprep.mubr.msk.f32.mxu1 %vm60_vm0, %v161_v30 }
  0xe4   :  { %4037 = vmatmul.mubr.msk.f32.gmra.mrb[2].mxu1 %vm60_vm0, %v4022_v29 }
  0xe5   :  { %v4025_v31 = vpop.f32.mrb[4].mxu0  ;;  %4846 = vmatpush3.bf16.msra.mxu1 %v5097_v20 }
  0xe6   :  { %v171_v32 = vpop.f32.mrb[5].mxu0  ;;  %4843 = vmatprep.subr.bf16.mxu1 %v5109_v23 }
  0xe7   :  { %4039 = vmatprep.mubr.msk.f32.mxu1 %vm60_vm0, %v171_v32 }
  0xe8   :  { %4040 = vmatmul.mubr.msk.f32.gmra.mrb[4].mxu1 %vm60_vm0, %v4025_v31 }
  0xe9   :  { %v4028_v33 = vpop.f32.mrb[6].mxu0  ;;  %4847 = vmatpush3.bf16.msra.mxu1 %v5109_v23 }
  0xea   :  { %v181_v34 = vpop.f32.mrb[7].mxu0  ;;  %4844 = vmatprep.subr.bf16.mxu1 %v5119_v26 }
  0xeb   :  { %4042 = vmatprep.mubr.msk.f32.mxu1 %vm60_vm0, %v181_v34 }
  0xec   :  { %4043 = vmatmul.mubr.msk.f32.gmra.mrb[6].mxu1 %vm60_vm0, %v4028_v33 }
  0xed   :  { %4848 = vmatpush3.bf16.msra.mxu1 %v5119_v26 }
  0xee   :  { %4602 = vmatprep.subr.bf16.mxu1 %v4601_v37 }
 0x1b3   :  { %v4035_v38 = vpop.f32.mrb[0].mxu1 }
 0x1b4   :  { %v280_v39 = vpop.f32.mrb[1].mxu1 }
 0x1b5   :  { %4061 = vmatprep.mubr.msk.f32.mxu0 %vm327_vm1, %v280_v39 }
 0x1b6   :  { %4062 = vmatmul.mubr.msk.f32.vlgmr.msra.gmra.mrb[8].mxu0 %vm327_vm1, %v4035_v38 }
 0x1b7   :  { %v4038_v40 = vpop.f32.mrb[2].mxu1  ;;  %4608 = vmatpush3.bf16.msra.mxu0 %v5035_v8 }
 0x1b8   :  { %v290_v41 = vpop.f32.mrb[3].mxu1 }
 0x1b9   :  { %4064 = vmatprep.mubr.msk.f32.mxu0 %vm327_vm1, %v290_v41 }
 0x1ba   :  { %4065 = vmatmul.mubr.msk.f32.gmra.mrb[10].mxu0 %vm327_vm1, %v4038_v40 }
 0x1bb   :  { %v4041_v42 = vpop.f32.mrb[4].mxu1 }
 0x1bc   :  { %v300_v43 = vpop.f32.mrb[5].mxu1 }
 0x1bd   :  { %4067 = vmatprep.mubr.msk.f32.mxu1 %vm327_vm1, %v300_v43  ;;  %v5895_v43 = vmov 0.0|0.0  }
 0x1be   :  { %4068 = vmatmul.mubr.msk.f32.vlgmr.msra.gmra.mrb[8].mxu1 %vm327_vm1, %v4041_v42  ;;  %4625 = vmatprep.subr.bf16.mxu0 %v5895_v43 }
 0x1bf   :  { %v4044_v44 = vpop.f32.mrb[6].mxu1  ;;  %4604 = vmatpush3.bf16.msra.mxu1 %v4601_v37 }
 0x1c0   :  { %v310_v45 = vpop.f32.mrb[7].mxu1  ;;  %4610 = vmatprep.subr.bf16.mxu1 %v5180_v49 }
 0x1c1   :  { %4070 = vmatprep.mubr.msk.f32.mxu1 %vm327_vm1, %v310_v45 }
 0x1c2   :  { %4071 = vmatmul.mubr.msk.f32.gmra.mrb[10].mxu1 %vm327_vm1, %v4044_v44 }
 0x1c3   :  { %4077 = vmatprep.mubr.msk.f32.mxu1 %vm60_vm0, %v5020_v3 }
 0x1c6   :  { %4078 = vmatmul.mubr.msk.f32.vlgmr.msra.gmra.mrb[12].mxu1 %vm60_vm0, %v5033_v7 }
 0x1c7   :  { %4080 = vmatprep.mubr.msk.f32.mxu1 %vm60_vm0, %v5040_v9  ;;  %4612 = vmatpush3.bf16.msra.mxu1 %v5180_v49 }
 0x1c8   :  { %4614 = vmatprep.subr.bf16.mxu1 %v5185_v51 }
 0x1ca   :  { %4081 = vmatmul.mubr.msk.f32.gmra.mrb[14].mxu1 %vm60_vm0, %v5051_v10 }
 0x1cb   :  { %4083 = vmatprep.mubr.msk.f32.mxu1 %vm60_vm0, %v5056_v11  ;;  %4616 = vmatpush3.bf16.msra.mxu1 %v5185_v51 }
 0x1cc   :  { %4618 = vmatprep.subr.bf16.mxu1 %v5196_v54 }
 0x1ce   :  { %4084 = vmatmul.mubr.msk.f32.gmra.mrb[16].mxu1 %vm60_vm0, %v5065_v12 }
 0x1cf   :  { %4086 = vmatprep.mubr.msk.f32.mxu1 %vm60_vm0, %v5070_v13  ;;  %4620 = vmatpush3.bf16.msra.mxu1 %v5196_v54 }
 0x1d0   :  { %4622 = vmatprep.subr.bf16.mxu1 %v5206_v57 }
 0x1d2   :  { %4087 = vmatmul.mubr.msk.f32.gmra.mrb[18].mxu1 %vm60_vm0, %v5079_v14 }
 0x1d3   :  { %4624 = vmatpush3.bf16.msra.mxu1 %v5206_v57 }
 0x1d4   :  { %4637 = vmatprep.subr.bf16.mxu1 %v5895_v43 }
 0x289   :  { %v4063_v60 = vpop.f32.mrb[8].mxu0 }
 0x28a   :  { %v466_v61 = vmul.f32 %v4063_v60, %v5214_v58  ;;  %v418_v62 = vpop.f32.mrb[9].mxu0  ;;  %v5297_v60 = vld [vmem:[%s5884_s4 + $0x48] sm:$0xff] }
 0x28b   :  { %v465_v63 = vmul.f32 %v5219_v59, %v418_v62 }
 0x28d   :  { %v4638_v2 = vpack.c.bf16 %v466_v61, %v465_v63  ;;  %v4066_v4 = vpop.f32.mrb[10].mxu0  ;;  %v5302_v61 = vld [vmem:[%s5884_s4 + $0x40] sm:$0xff] }
 0x28e   :  { %v468_v5 = vmul.f32 %v4066_v4, %v5226_v0  ;;  %v428_v6 = vpop.f32.mrb[11].mxu0 }
 0x28f   :  { %v467_v15 = vmul.f32 %v5231_v1, %v428_v6  ;;  %v5314_v6 = vld [vmem:[%s5884_s4 + $0x50] sm:$0xff] }
 0x291   :  { %v4641_v19 = vpack.c.bf16 %v468_v5, %v467_v15  ;;  %v4069_v21 = vpop.f32.mrb[8].mxu1  ;;  %v5309_v5 = vld [vmem:[%s5884_s4 + $0x58] sm:$0xff] }
 0x292   :  { %v470_v22 = vmul.f32 %v4069_v21, %v5238_v16  ;;  %v438_v24 = vpop.f32.mrb[9].mxu1 }
 0x293   :  { %v469_v25 = vmul.f32 %v5243_v17, %v438_v24 }
 0x295   :  { %v4644_v29 = vpack.c.bf16 %v470_v22, %v469_v25  ;;  %v4072_v30 = vpop.f32.mrb[10].mxu1  ;;  %v5321_v25 = vld [vmem:[%s5884_s4 + $0x68] sm:$0xff] }
 0x296   :  { %v472_v31 = vmul.f32 %v4072_v30, %v5250_v27  ;;  %v448_v32 = vpop.f32.mrb[11].mxu1 }
 0x297   :  { %v471_v33 = vmul.f32 %v5255_v28, %v448_v32 }
 0x299   :  { %v4647_v34 = vpack.c.bf16 %v472_v31, %v471_v33  ;;  %v4079_v35 = vpop.f32.mrb[12].mxu1 }
 0x29a   :  { %v542_v36 = vpop.f32.mrb[13].mxu1 }
 0x29b   :  { %4093 = vmatprep.mubr.msk.f32.mxu0 %vm60_vm0, %v542_v36  ;;  %v5339_v36 = vld [vmem:[%s5884_s4 + $0x70] sm:$0xff] }
 0x29c   :  { %4094 = vmatmul.mubr.msk.f32.vlgmr.msra.gmra.mrb[12].mxu0 %vm60_vm0, %v4079_v35  ;;  %v5334_v35 = vld [vmem:[%s5884_s4 + $0x78] sm:$0xff] }
 0x29d   :  { %v4082_v37 = vpop.f32.mrb[14].mxu1 }
 0x29e   :  { %v552_v38 = vpop.f32.mrb[15].mxu1 }
 0x29f   :  { %4096 = vmatprep.mubr.msk.f32.mxu0 %vm60_vm0, %v552_v38 }
 0x2a0   :  { %4097 = vmatmul.mubr.msk.f32.gmra.mrb[14].mxu0 %vm60_vm0, %v4082_v37 }
 0x2a1   :  { %v4085_v39 = vpop.f32.mrb[16].mxu1 }
 0x2a2   :  { %v562_v40 = vpop.f32.mrb[17].mxu1 }
 0x2a3   :  { %4099 = vmatprep.mubr.msk.f32.mxu0 %vm60_vm0, %v562_v40  ;;  %v3526_v40 = vld [vmem:[%s5880_s0 + $0x48] sm:$0xff] }
 0x2a4   :  { %4100 = vmatmul.mubr.msk.f32.gmra.mrb[16].mxu0 %vm60_vm0, %v4085_v39  ;;  %v3525_v39 = vld [vmem:[%s5880_s0 + $0x40] sm:$0xff] }
 0x2a5   :  { %v4088_v41 = vpop.f32.mrb[18].mxu1 }
 0x2a6   :  { %v572_v42 = vpop.f32.mrb[19].mxu1 }
 0x2a7   :  { %4102 = vmatprep.mubr.msk.f32.mxu0 %vm60_vm0, %v572_v42 }
 0x2a8   :  { %4103 = vmatmul.mubr.msk.f32.gmra.mrb[18].mxu0 %vm60_vm0, %v4088_v41 }
 0x2a9   :  { %4149 = vmatprep.mubr.msk.f32.mxu0 %vm4936_vm2, %v5893_v56 }
 0x36f   :  { %v4095_v44 = vpop.f32.mrb[12].mxu0 }
 0x370   :  { %v671_v45 = vpop.f32.mrb[13].mxu0 }
 0x371   :  { %4121 = vmatprep.mubr.msk.f32.mxu1 %vm327_vm1, %v671_v45  ;;  %v4649_v45 = vpack.c.bf16 %v3526_v40, %v3525_v39 }
 0x372   :  { %4122 = vmatmul.mubr.msk.f32.vlgmr.msra.gmra.mrb[20].mxu1 %vm327_vm1, %v4095_v44 }
 0x373   :  { %4639 = vmatpush3.bf16.msra.mxu1 %v4638_v2  ;;  %v4098_v46 = vpop.f32.mrb[14].mxu0 }
 0x374   :  { %v681_v47 = vpop.f32.mrb[15].mxu0  ;;  %4640 = vmatprep.subr.bf16.mxu1 %v5895_v43 }
 0x375   :  { %4124 = vmatprep.mubr.msk.f32.mxu1 %vm327_vm1, %v681_v47 }
 0x376   :  { %4125 = vmatmul.mubr.msk.f32.gmra.mrb[22].mxu1 %vm327_vm1, %v4098_v46 }
 0x377   :  { %4642 = vmatpush3.bf16.msra.mxu1 %v4641_v19  ;;  %v4101_v48 = vpop.f32.mrb[16].mxu0 }
 0x378   :  { %v691_v50 = vpop.f32.mrb[17].mxu0  ;;  %4643 = vmatprep.subr.bf16.mxu1 %v5895_v43 }
 0x379   :  { %4127 = vmatprep.mubr.msk.f32.mxu1 %vm327_vm1, %v691_v50  ;;  %v3543_v50 = vld [vmem:[%s5883_s3 + $0x80] sm:$0xff] }
 0x37a   :  { %4128 = vmatmul.mubr.msk.f32.gmra.mrb[24].mxu1 %vm327_vm1, %v4101_v48 }
 0x37b   :  { %4645 = vmatpush3.bf16.msra.mxu1 %v4644_v29  ;;  %v4104_v52 = vpop.f32.mrb[18].mxu0  ;;  %v5326_v29 = vld [vmem:[%s5884_s4 + $0x60] sm:$0xff] }
 0x37c   :  { %v701_v53 = vpop.f32.mrb[19].mxu0  ;;  %4646 = vmatprep.subr.bf16.mxu1 %v5895_v43 }
 0x37d   :  { %4130 = vmatprep.mubr.msk.f32.mxu1 %vm327_vm1, %v701_v53  ;;  %v3545_v53 = vld [vmem:[%s5883_s3 + $0x90] sm:$0xff] }
 0x37e   :  { %4131 = vmatmul.mubr.msk.f32.gmra.mrb[26].mxu1 %vm327_vm1, %v4104_v52  ;;  %v3544_v52 = vld [vmem:[%s5883_s3 + $0x88] sm:$0xff] }
 0x37f   :  { %4648 = vmatpush3.bf16.msra.mxu1 %v4647_v34  ;;  %4168 = vmatprep.mubr.msk.f32.mxu1 %vm4936_vm2, %v5893_v56 }
 0x380   :  { %4654 = vmatprep.subr.bf16.mxu1 %v5035_v8 }
 0x382   :  { %4169 = vmatmul.mubr.msk.f32.vlgmr.msra.gmra.mrb[28].mxu1 %vm327_vm1, %v5284_v55 }
 0x383   :  { %4656 = vmatpush3.bf16.msra.mxu1 %v5035_v8 }
 0x384   :  { %4673 = vmatprep.subr.bf16.mxu1 %v5895_v43 }
 0x445   :  { %v4123_v62 = vpop.f32.mrb[20].mxu1 }
 0x446   :  { %v858_v63 = vmul.f32 %v4123_v62, %v5297_v60  ;;  %v809_v2 = vpop.f32.mrb[21].mxu1  ;;  %v5378_v62 = vpack.c.bf16 %v3544_v52, %v3543_v50 }
 0x447   :  { %v857_v4 = vmul.f32 %v5302_v61, %v809_v2 }
 0x449   :  { %v4626_v15 = vpack.c.bf16 %v858_v63, %v857_v4  ;;  %v4126_v19 = vpop.f32.mrb[22].mxu1  ;;  %v3546_v63 = vld [vmem:[%s5883_s3 + $0x98] sm:$0xff]  ;;  %v3547_v4 = vld [vmem:[%s5883_s3 + $0xa0] sm:$0xff] }
 0x44a   :  { %v860_v21 = vmul.f32 %v4126_v19, %v5309_v5  ;;  %v819_v22 = vpop.f32.mrb[23].mxu1  ;;  %v5383_v2 = vpack.c.bf16 %v3546_v63, %v3545_v53  ;;  %v5435_v63 = vld [vmem:[%s5884_s4 + $0x88] sm:$0xff] }
 0x44b   :  { %v859_v24 = vmul.f32 %v5314_v6, %v819_v22  ;;  %4627 = vmatpush3.bf16.msra.mxu0 %v4626_v15  ;;  %v3548_v15 = vld [vmem:[%s5883_s3 + $0xa8] sm:$0xff]  ;;  %v3550_v22 = vld [vmem:[%s5883_s3 + $0xb8] sm:$0xff] }
 0x44c   :  { %4628 = vmatprep.subr.bf16.mxu0 %v5895_v43  ;;  %v5394_v19 = vpack.c.bf16 %v3548_v15, %v3547_v4  ;;  %v5440_v4 = vld [vmem:[%s5884_s4 + $0x80] sm:$0xff] }
 0x44d   :  { %v4629_v30 = vpack.c.bf16 %v860_v21, %v859_v24  ;;  %v4129_v31 = vpop.f32.mrb[24].mxu1  ;;  %v3549_v21 = vld [vmem:[%s5883_s3 + $0xb0] sm:$0xff] }
 0x44e   :  { %v862_v32 = vmul.f32 %v4129_v31, %v5321_v25  ;;  %v829_v33 = vpop.f32.mrb[25].mxu1  ;;  %v5404_v24 = vpack.c.bf16 %v3550_v22, %v3549_v21 }
 0x44f   :  { %v861_v34 = vmul.f32 %v5326_v29, %v829_v33  ;;  %4630 = vmatpush3.bf16.msra.mxu0 %v4629_v30 }
 0x450   :  { %4631 = vmatprep.subr.bf16.mxu0 %v5895_v43 }
 0x451   :  { %v4632_v37 = vpack.c.bf16 %v862_v32, %v861_v34  ;;  %v4132_v38 = vpop.f32.mrb[26].mxu1 }
 0x452   :  { %v864_v41 = vmul.f32 %v4132_v38, %v5334_v35  ;;  %v839_v42 = vpop.f32.mrb[27].mxu1 }
 0x453   :  { %v863_v44 = vmul.f32 %v5339_v36, %v839_v42  ;;  %4633 = vmatpush3.bf16.msra.mxu0 %v4632_v37 }
 0x454   :  { %4634 = vmatprep.subr.bf16.mxu0 %v5895_v43 }
 0x455   :  { %v4635_v46 = vpack.c.bf16 %v864_v41, %v863_v44  ;;  %v1004_v47 = vpop.f32.mrb[28].mxu1 }
 0x456   :  { %v4170_v48 = vpop.f32.mrb[29].mxu1 }
 0x457   :  { %4636 = vmatpush3.bf16.msra.mxu0 %v4635_v46 }
 0x458   :  { %4650 = vmatprep.subr.bf16.mxu0 %v4649_v45 }
 0x45a   :  { %4150 = vmatmul.mubr.msk.f32.vlgmr.msra.gmra.mrb[20].mxu0 %vm327_vm1, %v5284_v55 }
 0x45b   :  { %4652 = vmatpush3.bf16.msra.mxu0 %v4649_v45  ;;  %4175 = vmatprep.mubr.msk.f32.mxu0 %vm60_vm0, %v5020_v3 }
 0x45c   :  { %4658 = vmatprep.subr.bf16.mxu0 %v5378_v62 }
 0x45e   :  { %4176 = vmatmul.mubr.msk.f32.vlgmr.msra.gmra.mrb[22].mxu0 %vm60_vm0, %v5033_v7 }
 0x45f   :  { %4178 = vmatprep.mubr.msk.f32.mxu0 %vm60_vm0, %v5040_v9  ;;  %4660 = vmatpush3.bf16.msra.mxu0 %v5378_v62 }
 0x460   :  { %4662 = vmatprep.subr.bf16.mxu0 %v5383_v2 }
 0x462   :  { %4179 = vmatmul.mubr.msk.f32.gmra.mrb[24].mxu0 %vm60_vm0, %v5051_v10 }
 0x463   :  { %4181 = vmatprep.mubr.msk.f32.mxu0 %vm60_vm0, %v5056_v11  ;;  %4664 = vmatpush3.bf16.msra.mxu0 %v5383_v2 }
 0x464   :  { %4666 = vmatprep.subr.bf16.mxu0 %v5394_v19 }
 0x466   :  { %4182 = vmatmul.mubr.msk.f32.gmra.mrb[26].mxu0 %vm60_vm0, %v5065_v12 }
 0x467   :  { %4184 = vmatprep.mubr.msk.f32.mxu0 %vm60_vm0, %v5070_v13  ;;  %4668 = vmatpush3.bf16.msra.mxu0 %v5394_v19 }
 0x468   :  { %4670 = vmatprep.subr.bf16.mxu0 %v5404_v24 }
 0x46a   :  { %4185 = vmatmul.mubr.msk.f32.gmra.mrb[28].mxu0 %vm60_vm0, %v5079_v14 }
 0x46b   :  { %4672 = vmatpush3.bf16.msra.mxu0 %v5404_v24 }
 0x46c   :  { %4685 = vmatprep.subr.bf16.mxu0 %v5895_v43 }
 0x52d   :  { %v934_v30 = vpop.f32.mrb[20].mxu0 }
 0x52e   :  { %v5410_v31 = vadd.f32 %v1004_v47, %v934_v30  ;;  %v4151_v32 = vpop.f32.mrb[21].mxu0 }
 0x52f   :  { %v5447_v32 = vld [vmem:[%s5884_s4 + $0x98] sm:$0xff] }
 0x531   :  { %v4177_v33 = vpop.f32.mrb[22].mxu0 }
 0x532   :  { %v1077_v34 = vpop.f32.mrb[23].mxu0 }
 0x533   :  { %4191 = vmatprep.mubr.msk.f32.mxu1 %vm60_vm0, %v1077_v34 }
 0x534   :  { %4192 = vmatmul.mubr.msk.f32.vlgmr.msra.gmra.mrb[30].mxu1 %vm60_vm0, %v4177_v33  ;;  %v5452_v33 = vld [vmem:[%s5884_s4 + $0x90] sm:$0xff] }
 0x535   :  { %v4180_v37 = vpop.f32.mrb[24].mxu0  ;;  %5902 = vst [vmem:[#allocation9_spill] sm:$0xff] %v5452_v33 }
 0x536   :  { %v1087_v38 = vpop.f32.mrb[25].mxu0 }
 0x537   :  { %4194 = vmatprep.mubr.msk.f32.mxu1 %vm60_vm0, %v1087_v38 }
 0x538   :  { %4195 = vmatmul.mubr.msk.f32.gmra.mrb[32].mxu1 %vm60_vm0, %v4180_v37 }
 0x539   :  { %v4183_v39 = vpop.f32.mrb[26].mxu0 }
 0x53a   :  { %v1097_v40 = vpop.f32.mrb[27].mxu0 }
 0x53b   :  { %4197 = vmatprep.mubr.msk.f32.mxu1 %vm60_vm0, %v1097_v40 }
 0x53c   :  { %4198 = vmatmul.mubr.msk.f32.gmra.mrb[34].mxu1 %vm60_vm0, %v4183_v39 }
 0x53d   :  { %v4186_v41 = vpop.f32.mrb[28].mxu0 }
 0x53e   :  { %v1107_v42 = vpop.f32.mrb[29].mxu0 }
 0x53f   :  { %4200 = vmatprep.mubr.msk.f32.mxu1 %vm60_vm0, %v1107_v42  ;;  %v5464_v42 = vld [vmem:[%s5884_s4 + $0xa0] sm:$0xff] }
 0x540   :  { %4201 = vmatmul.mubr.msk.f32.gmra.mrb[36].mxu1 %vm60_vm0, %v4186_v41  ;;  %v5459_v41 = vld [vmem:[%s5884_s4 + $0xa8] sm:$0xff]  ;;  %5904 = vst [vmem:[#allocation11_spill] sm:$0xff] %v5464_v42 }
 0x541   :  { %4247 = vmatprep.mubr.msk.f32.mxu1 %vm4936_vm2, %v5893_v56  ;;  %5903 = vst [vmem:[#allocation10_spill] sm:$0xff] %v5459_v41 }
 0x607   :  { %v4193_v44 = vpop.f32.mrb[30].mxu1 }
 0x608   :  { %v1206_v45 = vpop.f32.mrb[31].mxu1 }
 0x609   :  { %4219 = vmatprep.mubr.msk.f32.mxu0 %vm327_vm1, %v1206_v45 }
 0x60a   :  { %4220 = vmatmul.mubr.msk.f32.vlgmr.msra.gmra.mrb[30].mxu0 %vm327_vm1, %v4193_v44 }
 0x60b   :  { %v4196_v46 = vpop.f32.mrb[32].mxu1 }
 0x60c   :  { %v1216_v47 = vpop.f32.mrb[33].mxu1 }
 0x60d   :  { %4222 = vmatprep.mubr.msk.f32.mxu0 %vm327_vm1, %v1216_v47 }
 0x60e   :  { %4223 = vmatmul.mubr.msk.f32.gmra.mrb[32].mxu0 %vm327_vm1, %v4196_v46 }
 0x60f   :  { %v4199_v48 = vpop.f32.mrb[34].mxu1 }
 0x610   :  { %v1226_v50 = vpop.f32.mrb[35].mxu1 }
 0x611   :  { %4225 = vmatprep.mubr.msk.f32.mxu0 %vm327_vm1, %v1226_v50  ;;  %v5472_v50 = vld [vmem:[%s5884_s4 + $0xb8] sm:$0xff] }
 0x612   :  { %4226 = vmatmul.mubr.msk.f32.gmra.mrb[34].mxu0 %vm327_vm1, %v4199_v48  ;;  %5905 = vst [vmem:[#allocation12_spill] sm:$0xff] %v5472_v50 }
 0x613   :  { %v4202_v52 = vpop.f32.mrb[36].mxu1 }
 0x614   :  { %v1236_v53 = vpop.f32.mrb[37].mxu1 }
 0x615   :  { %4228 = vmatprep.mubr.msk.f32.mxu0 %vm327_vm1, %v1236_v53 }
 0x616   :  { %4229 = vmatmul.mubr.msk.f32.gmra.mrb[36].mxu0 %vm327_vm1, %v4202_v52  ;;  %v5477_v52 = vld [vmem:[%s5884_s4 + $0xb0] sm:$0xff] }
 0x617   :  { %4282 = vmatprep.mubr.msk.f32.mxu0 %vm4936_vm2, %v5893_v56  ;;  %5906 = vst [vmem:[#allocation13_spill] sm:$0xff] %v5477_v52 }
 0x6dd   :  { %v4221_v15 = vpop.f32.mrb[30].mxu0 }
 0x6de   :  { %v1393_v21 = vmul.f32 %v4221_v15, %v5435_v63  ;;  %v1344_v22 = vpop.f32.mrb[31].mxu0 }
 0x6df   :  { %v1392_v30 = vmul.f32 %v5440_v4, %v1344_v22 }
 0x6e1   :  { %v4674_v34 = vpack.c.bf16 %v1393_v21, %v1392_v30  ;;  %v4224_v37 = vpop.f32.mrb[32].mxu0 }
 0x6e2   :  { %v1395_v38 = vmul.f32 %v4224_v37, %v5447_v32  ;;  %v1354_v39 = vpop.f32.mrb[33].mxu0  ;;  %v1488_v37 = vld [vmem:[%s5887_s7] sm:$0xff] }
 0x6e3   :  { %v1394_v40 = vmul.f32 %v5452_v33, %v1354_v39  ;;  %4675 = vmatpush3.bf16.msra.mxu1 %v4674_v34 }
 0x6e4   :  { %4676 = vmatprep.subr.bf16.mxu1 %v5895_v43 }
 0x6e5   :  { %v4677_v44 = vpack.c.bf16 %v1395_v38, %v1394_v40  ;;  %v4227_v45 = vpop.f32.mrb[34].mxu0  ;;  %v1489_v38 = vld [vmem:[%s5887_s7 + $0x8] sm:$0xff]  ;;  %v1490_v40 = vld [vmem:[%s5887_s7 + $0x10] sm:$0xff] }
 0x6e6   :  { %v1397_v46 = vmul.f32 %v4227_v45, %v5459_v41  ;;  %v1364_v47 = vpop.f32.mrb[35].mxu0  ;;  %v5494_v39 = vpack.c.bf16 %v1489_v38, %v1488_v37  ;;  %v1498_v37 = vld [vmem:[%s5887_s7 + $0x50] sm:$0xff]  ;;  %v1499_v38 = vld [vmem:[%s5887_s7 + $0x58] sm:$0xff] }
 0x6e7   :  { %v1396_v48 = vmul.f32 %v5464_v42, %v1364_v47  ;;  %4678 = vmatpush3.bf16.msra.mxu1 %v4677_v44  ;;  %v1491_v44 = vld [vmem:[%s5887_s7 + $0x18] sm:$0xff]  ;;  %v1493_v47 = vld [vmem:[%s5887_s7 + $0x28] sm:$0xff] }
 0x6e8   :  { %4679 = vmatprep.subr.bf16.mxu1 %v5895_v43  ;;  %4687 = vmatpush3.bf16.msra.mxu0 %v5494_v39  ;;  %v5504_v45 = vpack.c.bf16 %v1491_v44, %v1490_v40  ;;  %v5544_v40 = vpack.c.bf16 %v1499_v38, %v1498_v37  ;;  %v1500_v44 = vld [vmem:[%s5887_s7 + $0x60] sm:$0xff] }
 0x6e9   :  { %v4680_v53 = vpack.c.bf16 %v1397_v46, %v1396_v48  ;;  %v4230_v15 = vpop.f32.mrb[36].mxu0  ;;  %4688 = vmatprep.subr.bf16.mxu0 %v5895_v43  ;;  %v1492_v46 = vld [vmem:[%s5887_s7 + $0x20] sm:$0xff] }
 0x6ea   :  { %v1399_v21 = vmul.f32 %v4230_v15, %v5472_v50  ;;  %v1374_v22 = vpop.f32.mrb[37].mxu0  ;;  %v5514_v48 = vpack.c.bf16 %v1493_v47, %v1492_v46  ;;  %v1495_v15 = vld [vmem:[%s5887_s7 + $0x38] sm:$0xff]  ;;  %v1501_v46 = vld [vmem:[%s5887_s7 + $0x68] sm:$0xff]  ;;  %v5570_v37 = vld [vmem:[%s5886_s6] ss:$0 sm:$0xff] }
 0x6eb   :  { %v1398_v30 = vmul.f32 %v5477_v52, %v1374_v22  ;;  %4681 = vmatpush3.bf16.msra.mxu1 %v4680_v53  ;;  %v1494_v53 = vld [vmem:[%s5887_s7 + $0x30] sm:$0xff]  ;;  %v1496_v22 = vld [vmem:[%s5887_s7 + $0x40] sm:$0xff]  ;;  %v5554_v47 = vpack.c.bf16 %v1501_v46, %v1500_v44 }
 0x6ec   :  { %4682 = vmatprep.subr.bf16.mxu1 %v5895_v43  ;;  %4690 = vmatpush3.bf16.msra.mxu0 %v5504_v45 }
 0x6ed   :  { %v4683_v34 = vpack.c.bf16 %v1399_v21, %v1398_v30  ;;  %4691 = vmatprep.subr.bf16.mxu0 %v5895_v43  ;;  %v5524_v21 = vpack.c.bf16 %v1495_v15, %v1494_v53  ;;  %v1497_v30 = vld [vmem:[%s5887_s7 + $0x48] sm:$0xff]  ;;  %v1502_v53 = vld [vmem:[%s5887_s7 + $0x70] sm:$0xff]  ;;  %v1503_v15 = vld [vmem:[%s5887_s7 + $0x78] sm:$0xff] }
 0x6ef   :  { %4684 = vmatpush3.bf16.msra.mxu1 %v4683_v34  ;;  %v5534_v34 = vpack.c.bf16 %v1497_v30, %v1496_v22  ;;  %v5564_v22 = vpack.c.bf16 %v1503_v15, %v1502_v53 }
 0x6f0   :  { %4285 = vmatprep.subr.mxu1 %v5893_v56  ;;  %4693 = vmatpush3.bf16.msra.mxu0 %v5514_v48 }
 0x6f1   :  { %4694 = vmatprep.subr.bf16.mxu0 %v5895_v43 }
 0x6f2   :  { %4248 = vmatmul.mubr.msk.f32.vlgmr.msra.gmra.mrb[38].mxu1 %vm327_vm1, %v5284_v55 }
 0x6f3   :  { %4287 = vmatprep.mubr.msk.f32.mxu1 %vm4936_vm2, %v5893_v56 }
 0x6f4   :  { %4696 = vmatpush3.bf16.msra.mxu0 %v5524_v21 }
 0x6f5   :  { %4697 = vmatprep.subr.bf16.mxu0 %v5895_v43 }
 0x6f8   :  { %4699 = vmatpush3.bf16.msra.mxu0 %v5534_v34 }
 0x6f9   :  { %4700 = vmatprep.subr.bf16.mxu0 %v5895_v43 }
 0x6fc   :  { %4702 = vmatpush3.bf16.msra.mxu0 %v5544_v40 }
 0x6fd   :  { %4703 = vmatprep.subr.bf16.mxu0 %v5895_v43 }
 0x700   :  { %4705 = vmatpush3.bf16.msra.mxu0 %v5554_v47 }
 0x701   :  { %4706 = vmatprep.subr.bf16.mxu0 %v5895_v43 }
 0x704   :  { %4708 = vmatpush3.bf16.msra.mxu0 %v5564_v22 }
 0x7c5   :  { %v1466_v30 = vpop.f32.mrb[38].mxu1 }
 0x7c6   :  { %v1470_v38 = vadd.f32 %v1466_v30, %v5410_v31  ;;  %v4249_v44 = vpop.f32.mrb[39].mxu1  ;;  %v5579_v31 = vld [vmem:[%s5890_s10] sm:$0xf]  ;;  %v4938_v30 = vmov 0  }
 0x7c7   :  { %4286 = vmatpush3.msk.msra.mxu1 %vm1578_vm3, %v5579_v31  ;;  %4857 = vset.pattern.permute.xlu0 %v4938_v30  ;;  %v3577_v44 = vld [vmem:[%s5880_s0 + $0x10] sm:$0xff] }
 0x7c8   :  { %v1478_v46 = vadd.f32 %v5570_v37, %v1470_v38  ;;  %v5907_v38 = vmov 0.0|0.0  }
 0x7ca   :  { %v1479_v56 = vmul.f32 %v1478_v46, %v1478_v46 }
 0x7cc   :  { %v1480_v43 = vmul.f32 %v1479_v56, %v1478_v46 }
 0x7ce   :  { %v1481_v52 = vmul.f32 0.044715, %v1480_v43 }
 0x7d0   :  { %v1482_v50 = vadd.f32 %v1481_v52, %v1478_v46  ;;  %v3571_v52 = vld [vmem:[#allocation2] ss:$0 sm:$0xff] }
 0x7d1   :  { %1659 = vperm.xlu0 %4857, %v3571_v52  }
 0x7d2   :  { %v1483_v42 = vmul.f32 0.7978846, %v1482_v50 }
 0x7d4   :  { %4858 = vtanh.f32 %v1483_v42  ;;  %v3604_v42 = vld [vmem:[%s5880_s0 + $0x38] sm:$0xff] }
 0x7d5   :  { %3326 = vperm.xlu0 %4857, %v3571_v52  }
 0x7de   :  { %v4859_v53 = vpop.eup %4858 }
 0x7df   :  { %v1485_v15 = vadd.f32 1.0, %v4859_v53 }
 0x7e1   :  { %v1486_v41 = vmul.f32 0.5, %v1485_v15 }
 0x7e3   :  { %v1487_v33 = vmul.f32 %v1486_v41, %v1478_v46  ;;  %v3603_v41 = vld [vmem:[%s5880_s0 + $0x30] sm:$0xff]  ;;  %v3578_v46 = vld [vmem:[%s5880_s0 + $0x18] sm:$0xff] }
 0x7e4   :  { %v4733_v50 = vpack.c.bf16 %v3604_v42, %v3603_v41  ;;  %v4709_v53 = vpack.c.bf16 %v3578_v46, %v3577_v44  ;;  %v5908_v41 = vmov 0.0  }
 0x7e5   :  { %4283 = vmatmul.mubr.f32.vlgmr.msra.gmra.mrb[38].mxu0 %v1487_v33  ;;  %v5587_v33 = vld [vmem:[%s5889_s9] sm:$0xff] }
 0x7e6   :  { %4359 = vmatprep.mubr.msk.f32.mxu0 %vm60_vm0, %v5020_v3  ;;  %4734 = vmatprep.subr.bf16.mxu0 %v4733_v50 }
 0x7e7   :  { %4736 = vmatpush3.bf16.msra.mxu0 %v4733_v50 }
 0x7e8   :  { %4738 = vmatprep.subr.bf16.mxu0 %v5035_v8 }
 0x7ea   :  { %4360 = vmatmul.mubr.msk.f32.vlgmr.msra.gmra.mrb[40].mxu0 %vm60_vm0, %v5033_v7 }
 0x7eb   :  { %4362 = vmatprep.mubr.msk.f32.mxu0 %vm60_vm0, %v5040_v9  ;;  %4740 = vmatpush3.bf16.msra.mxu0 %v5035_v8 }
 0x7ec   :  { %4757 = vmatprep.subr.bf16.mxu0 %v5907_v38 }
 0x7ee   :  { %4363 = vmatmul.mubr.msk.f32.gmra.mrb[42].mxu0 %vm60_vm0, %v5051_v10 }
 0x7ef   :  { %4365 = vmatprep.mubr.msk.f32.mxu0 %vm60_vm0, %v5056_v11 }
 0x7f2   :  { %4366 = vmatmul.mubr.msk.f32.gmra.mrb[44].mxu0 %vm60_vm0, %v5065_v12 }
 0x7f3   :  { %4368 = vmatprep.mubr.msk.f32.mxu0 %vm60_vm0, %v5070_v13 }
 0x7f6   :  { %4369 = vmatmul.mubr.msk.f32.gmra.mrb[46].mxu0 %vm60_vm0, %v5079_v14 }
 0x850   :  { %v1660_v42 = vpop.permute.xlu0 %1659 }
 0x8b8   :  { %v1570_v43 = vpop.f32.mrb[38].mxu0 }
 0x8b9   :  { %v4284_v56 = vpop.f32.mrb[39].mxu0  ;;  %4288 = vmatmul.mubr.msk.f32.vlgmr.msra.gmra.mrb[40].mxu1 %vm1574_vm4, %v1570_v43  ;;  %v5623_v43 = vld [vmem:[%s5889_s9 + $0x8] sm:$0xff] }
 0x8ba   :  { %4292 = vmatprep.mubr.msk.f32.mxu1 %vm1574_vm4, %v5587_v33 }
 0x98c   :  { %v1648_v15 = vpop.f32.mrb[40].mxu1 }
 0x98d   :  { %v4289_v56 = vpop.f32.mrb[41].mxu1  ;;  %4290 = vmatprep.subr.msk.mxu1 %vm1578_vm3, %v1648_v15 }
 0x98e   :  { %4291 = vmatpush3.msk.msra.mxu1 %vm1578_vm3, %v1648_v15 }
 0x98f   :  { %4293 = vmatmul.mubr.msk.f32.vlgmr.msra.gmra.mrb[42].mxu1 %vm1574_vm4, %v5623_v43  ;;  %4710 = vmatprep.subr.bf16.mxu1 %v4709_v53 }
 0x990   :  { %4712 = vmatpush3.bf16.msra.mxu1 %v4709_v53  ;;  %4299 = vmatprep.mubr.msk.f32.mxu1 %vm60_vm0, %v5020_v3  ;;  %v4361_v3 = vpop.f32.mrb[40].mxu0 }
 0x991   :  { %4714 = vmatprep.subr.bf16.mxu1 %v5035_v8 }
 0x993   :  { %4300 = vmatmul.mubr.msk.f32.vlgmr.msra.gmra.mrb[44].mxu1 %vm60_vm0, %v5033_v7  ;;  %v2221_v7 = vpop.f32.mrb[41].mxu0 }
 0x994   :  { %4302 = vmatprep.mubr.msk.f32.mxu1 %vm60_vm0, %v5040_v9  ;;  %4716 = vmatpush3.bf16.msra.mxu1 %v5035_v8  ;;  %v4364_v9 = vpop.f32.mrb[42].mxu0 }
 0x995   :  { %4718 = vmatprep.subr.bf16.mxu1 %v5092_v18  ;;  %4375 = vmatprep.mubr.msk.f32.mxu0 %vm60_vm0, %v2221_v7 }
 0x996   :  { %4376 = vmatmul.mubr.msk.f32.vlgmr.msra.gmra.mrb[48].mxu0 %vm60_vm0, %v4361_v3 }
 0x997   :  { %4303 = vmatmul.mubr.msk.f32.gmra.mrb[46].mxu1 %vm60_vm0, %v5051_v10  ;;  %v2231_v10 = vpop.f32.mrb[43].mxu0 }
 0x998   :  { %4305 = vmatprep.mubr.msk.f32.mxu1 %vm60_vm0, %v5056_v11  ;;  %4378 = vmatprep.mubr.msk.f32.mxu0 %vm60_vm0, %v2231_v10  ;;  %v4367_v11 = vpop.f32.mrb[44].mxu0 }
 0x99a   :  { %4379 = vmatmul.mubr.msk.f32.gmra.mrb[50].mxu0 %vm60_vm0, %v4364_v9 }
 0x99b   :  { %4306 = vmatmul.mubr.msk.f32.gmra.mrb[48].mxu1 %vm60_vm0, %v5065_v12  ;;  %v2241_v12 = vpop.f32.mrb[45].mxu0 }
 0x99c   :  { %4308 = vmatprep.mubr.msk.f32.mxu1 %vm60_vm0, %v5070_v13  ;;  %4381 = vmatprep.mubr.msk.f32.mxu0 %vm60_vm0, %v2241_v12  ;;  %v4370_v13 = vpop.f32.mrb[46].mxu0 }
 0x99e   :  { %4382 = vmatmul.mubr.msk.f32.gmra.mrb[52].mxu0 %vm60_vm0, %v4367_v11 }
 0x99f   :  { %4309 = vmatmul.mubr.msk.f32.gmra.mrb[50].mxu1 %vm60_vm0, %v5079_v14  ;;  %v2251_v14 = vpop.f32.mrb[47].mxu0 }
 0x9a0   :  { %4384 = vmatprep.mubr.msk.f32.mxu0 %vm60_vm0, %v2251_v14 }
 0x9a2   :  { %4385 = vmatmul.mubr.msk.f32.gmra.mrb[54].mxu0 %vm60_vm0, %v4370_v13 }
 0x9a3   :  { %4431 = vmatprep.mubr.msk.f32.mxu0 %vm4936_vm2, %v5908_v41 }
 0xa62   :  { %v4294_v50 = vpop.f32.mrb[42].mxu1 }
 0xa63   :  { %v1743_v52 = vadd.f32 %v4294_v50, %v1660_v42  ;;  %v1737_v30 = vpop.f32.mrb[43].mxu1 }
 0xa64   :  { %v1738_v44 = vadd.f32 %v1737_v30, %v1660_v42 }
 0xa65   :  { %1747 = vst.msk [vmem:[#allocation3 + $0x8] sm:$0xff] %vm60_vm0, %v1743_v52  ;;  %v3576_v46 = vmul.f32 -1.442695, %v1743_v52 }
 0xa66   :  { %1746 = vst.msk [vmem:[#allocation3] sm:$0xff] %vm60_vm0, %v1738_v44  ;;  %v3575_v53 = vmul.f32 -1.442695, %v1738_v44  ;;  %v4301_v15 = vpop.f32.mrb[44].mxu1 }
 0xa67   :  { %4860 = vpow2.f32 %v3576_v46  ;;  %v1831_v56 = vpop.f32.mrb[45].mxu1 }
 0xa68   :  { %4862 = vpow2.f32 %v3575_v53  ;;  %4315 = vmatprep.mubr.msk.f32.mxu1 %vm60_vm0, %v1831_v56 }
 0xa69   :  { %4316 = vmatmul.mubr.msk.f32.vlgmr.msra.gmra.mrb[52].mxu1 %vm60_vm0, %v4301_v15 }
 0xa6a   :  { %v4304_v3 = vpop.f32.mrb[46].mxu1  ;;  %4720 = vmatpush3.bf16.msra.mxu1 %v5092_v18 }
 0xa6b   :  { %v1841_v7 = vpop.f32.mrb[47].mxu1  ;;  %4722 = vmatprep.subr.bf16.mxu1 %v5097_v20 }
 0xa6c   :  { %4318 = vmatprep.mubr.msk.f32.mxu1 %vm60_vm0, %v1841_v7 }
 0xa6d   :  { %4319 = vmatmul.mubr.msk.f32.gmra.mrb[54].mxu1 %vm60_vm0, %v4304_v3 }
 0xa6e   :  { %v4307_v9 = vpop.f32.mrb[48].mxu1  ;;  %4724 = vmatpush3.bf16.msra.mxu1 %v5097_v20 }
 0xa6f   :  { %v1851_v10 = vpop.f32.mrb[49].mxu1  ;;  %4726 = vmatprep.subr.bf16.mxu1 %v5109_v23 }
 0xa70   :  { %4321 = vmatprep.mubr.msk.f32.mxu1 %vm60_vm0, %v1851_v10 }
 0xa71   :  { %v4861_v11 = vpop.eup %4860  ;;  %4322 = vmatmul.mubr.msk.f32.gmra.mrb[56].mxu1 %vm60_vm0, %v4307_v9 }
 0xa72   :  { %v4863_v12 = vpop.eup %4862  ;;  %v1755_v18 = vadd.f32 1.0, %v4861_v11  ;;  %v4310_v13 = vpop.f32.mrb[50].mxu1  ;;  %4728 = vmatpush3.bf16.msra.mxu1 %v5109_v23 }
 0xa73   :  { %v1754_v14 = vadd.f32 1.0, %v4863_v12  ;;  %v1861_v42 = vpop.f32.mrb[51].mxu1  ;;  %4730 = vmatprep.subr.bf16.mxu1 %v5119_v26  ;;  %v4377_v23 = vpop.f32.mrb[48].mxu0 }
 0xa74   :  { %4864 = vrcp.f32 %v1755_v18  ;;  %4324 = vmatprep.mubr.msk.f32.mxu1 %vm60_vm0, %v1861_v42  ;;  %v2350_v52 = vpop.f32.mrb[49].mxu0 }
 0xa75   :  { %4866 = vrcp.f32 %v1754_v14  ;;  %4325 = vmatmul.mubr.msk.f32.gmra.mrb[58].mxu1 %vm60_vm0, %v4310_v13  ;;  %v4380_v30 = vpop.f32.mrb[50].mxu0 }
 0xa76   :  { %4732 = vmatpush3.bf16.msra.mxu1 %v5119_v26  ;;  %v2360_v44 = vpop.f32.mrb[51].mxu0 }
 0xa77   :  { %4742 = vmatprep.subr.bf16.mxu1 %v5180_v49  ;;  %v4383_v46 = vpop.f32.mrb[52].mxu0 }
 0xa78   :  { %v2370_v53 = vpop.f32.mrb[53].mxu0 }
 0xa79   :  { %v4386_v15 = vpop.f32.mrb[54].mxu0 }
 0xa7a   :  { %v2380_v56 = vpop.f32.mrb[55].mxu0 }
 0xa7e   :  { %v4865_v20 = vpop.eup %4864 }
 0xa7f   :  { %v4867_v50 = vpop.eup %4866  ;;  %1761 = vst.msk [vmem:[#allocation5 + $0x8] sm:$0xff] %vm60_vm0, %v4865_v20 }
 0xa80   :  { %1760 = vst.msk [vmem:[#allocation5] sm:$0xff] %vm60_vm0, %v4867_v50 }
 0xb3c   :  { %v4317_v3 = vpop.f32.mrb[52].mxu1 }
 0xb3d   :  { %v1960_v7 = vpop.f32.mrb[53].mxu1 }
 0xb3e   :  { %4343 = vmatprep.mubr.msk.f32.mxu1 %vm327_vm1, %v1960_v7 }
 0xb3f   :  { %4344 = vmatmul.mubr.msk.f32.vlgmr.msra.gmra.mrb[60].mxu1 %vm327_vm1, %v4317_v3 }
 0xb40   :  { %v4320_v26 = vpop.f32.mrb[54].mxu1  ;;  %4744 = vmatpush3.bf16.msra.mxu1 %v5180_v49 }
 0xb41   :  { %v1970_v9 = vpop.f32.mrb[55].mxu1  ;;  %4746 = vmatprep.subr.bf16.mxu1 %v5185_v51 }
 0xb42   :  { %4346 = vmatprep.mubr.msk.f32.mxu1 %vm327_vm1, %v1970_v9 }
 0xb43   :  { %4347 = vmatmul.mubr.msk.f32.gmra.mrb[62].mxu1 %vm327_vm1, %v4320_v26 }
 0xb44   :  { %v4323_v10 = vpop.f32.mrb[56].mxu1  ;;  %4748 = vmatpush3.bf16.msra.mxu1 %v5185_v51 }
 0xb45   :  { %v1980_v11 = vpop.f32.mrb[57].mxu1  ;;  %4750 = vmatprep.subr.bf16.mxu1 %v5196_v54 }
 0xb46   :  { %4349 = vmatprep.mubr.msk.f32.mxu1 %vm327_vm1, %v1980_v11 }
 0xb47   :  { %4350 = vmatmul.mubr.msk.f32.gmra.mrb[64].mxu1 %vm327_vm1, %v4323_v10 }
 0xb48   :  { %v4326_v12 = vpop.f32.mrb[58].mxu1  ;;  %4752 = vmatpush3.bf16.msra.mxu1 %v5196_v54 }
 0xb49   :  { %v1990_v49 = vpop.f32.mrb[59].mxu1  ;;  %4754 = vmatprep.subr.bf16.mxu1 %v5206_v57 }
 0xb4a   :  { %4352 = vmatprep.mubr.msk.f32.mxu1 %vm327_vm1, %v1990_v49 }
 0xb4b   :  { %4353 = vmatmul.mubr.msk.f32.gmra.mrb[66].mxu1 %vm327_vm1, %v4326_v12 }
 0xb4c   :  { %4756 = vmatpush3.bf16.msra.mxu1 %v5206_v57  ;;  %4403 = vmatprep.mubr.msk.f32.mxu1 %vm327_vm1, %v2350_v52 }
 0xb4d   :  { %4769 = vmatprep.subr.bf16.mxu1 %v5907_v38 }
 0xb4f   :  { %4404 = vmatmul.mubr.msk.f32.vlgmr.msra.gmra.mrb[68].mxu1 %vm327_vm1, %v4377_v23 }
 0xb50   :  { %4406 = vmatprep.mubr.msk.f32.mxu1 %vm327_vm1, %v2360_v44 }
 0xb53   :  { %4407 = vmatmul.mubr.msk.f32.gmra.mrb[70].mxu1 %vm327_vm1, %v4380_v30 }
 0xb54   :  { %4409 = vmatprep.mubr.msk.f32.mxu1 %vm327_vm1, %v2370_v53 }
 0xb57   :  { %4410 = vmatmul.mubr.msk.f32.gmra.mrb[72].mxu1 %vm327_vm1, %v4383_v46 }
 0xb58   :  { %4412 = vmatprep.mubr.msk.f32.mxu1 %vm327_vm1, %v2380_v56 }
 0xb5b   :  { %4413 = vmatmul.mubr.msk.f32.gmra.mrb[74].mxu1 %vm327_vm1, %v4386_v15 }
 0xb5c   :  { %4450 = vmatprep.mubr.msk.f32.mxu1 %vm4936_vm2, %v5908_v41 }
 0xc12   :  { %v4345_v51 = vpop.f32.mrb[60].mxu1 }
 0xc13   :  { %v2145_v54 = vmul.f32 %v4345_v51, %v5214_v58  ;;  %v2097_v57 = vpop.f32.mrb[61].mxu1 }
 0xc14   :  { %v2144_v18 = vmul.f32 %v2097_v57, %v5219_v59 }
 0xc16   :  { %v4770_v13 = vpack.c.bf16 %v2145_v54, %v2144_v18  ;;  %v4348_v14 = vpop.f32.mrb[62].mxu1  ;;  %v4878_v18 = vld [vmem:[%s5881_s1] sm:$0xff] }
 0xc17   :  { %v2147_v42 = vmul.f32 %v4348_v14, %v5226_v0  ;;  %v2107_v20 = vpop.f32.mrb[63].mxu1  ;;  %v4884_v14 = vld [vmem:[%s5881_s1 + $0x30] sm:$0xff] }
 0xc18   :  { %v2146_v50 = vmul.f32 %v2107_v20, %v5231_v1  ;;  %4771 = vmatpush3.bf16.msra.mxu1 %v4770_v13  ;;  %v4882_v13 = vld [vmem:[%s5881_s1 + $0x20] sm:$0xff] }
 0xc19   :  { %4772 = vmatprep.subr.bf16.mxu1 %v5907_v38 }
 0xc1a   :  { %v4773_v23 = vpack.c.bf16 %v2147_v42, %v2146_v50  ;;  %v4351_v52 = vpop.f32.mrb[64].mxu1 }
 0xc1b   :  { %v2149_v30 = vmul.f32 %v4351_v52, %v5238_v16  ;;  %v2117_v44 = vpop.f32.mrb[65].mxu1 }
 0xc1c   :  { %v2148_v58 = vmul.f32 %v2117_v44, %v5243_v17  ;;  %4774 = vmatpush3.bf16.msra.mxu1 %v4773_v23 }
 0xc1d   :  { %4775 = vmatprep.subr.bf16.mxu1 %v5907_v38 }
 0xc1e   :  { %v4776_v59 = vpack.c.bf16 %v2149_v30, %v2148_v58  ;;  %v4354_v46 = vpop.f32.mrb[66].mxu1 }
 0xc1f   :  { %v2151_v0 = vmul.f32 %v4354_v46, %v5250_v27  ;;  %v2127_v53 = vpop.f32.mrb[67].mxu1 }
 0xc20   :  { %v2150_v1 = vmul.f32 %v2127_v53, %v5255_v28  ;;  %4777 = vmatpush3.bf16.msra.mxu1 %v4776_v59 }
 0xc21   :  { %4778 = vmatprep.subr.bf16.mxu1 %v5907_v38 }
 0xc22   :  { %v4779_v15 = vpack.c.bf16 %v2151_v0, %v2150_v1  ;;  %v4405_v56 = vpop.f32.mrb[68].mxu1 }
 0xc23   :  { %v2535_v16 = vmul.f32 %v4405_v56, %v5297_v60  ;;  %v2487_v3 = vpop.f32.mrb[69].mxu1 }
 0xc24   :  { %v2534_v17 = vmul.f32 %v5302_v61, %v2487_v3  ;;  %4780 = vmatpush3.bf16.msra.mxu1 %v4779_v15 }
 0xc25   :  { %4786 = vmatprep.subr.bf16.mxu1 %v5035_v8 }
 0xc26   :  { %v4758_v7 = vpack.c.bf16 %v2535_v16, %v2534_v17  ;;  %v4408_v26 = vpop.f32.mrb[70].mxu1 }
 0xc27   :  { %v2537_v27 = vmul.f32 %v4408_v26, %v5309_v5  ;;  %v2497_v9 = vpop.f32.mrb[71].mxu1  ;;  %4451 = vmatmul.mubr.msk.f32.vlgmr.msra.gmra.mrb[76].mxu1 %vm327_vm1, %v5284_v55 }
 0xc28   :  { %v2536_v28 = vmul.f32 %v5314_v6, %v2497_v9  ;;  %4759 = vmatpush3.bf16.msra.mxu0 %v4758_v7  ;;  %4788 = vmatpush3.bf16.msra.mxu1 %v5035_v8  ;;  %v3647_v8 = vld [vmem:[%s5880_s0 + $0x50] sm:$0xff]  ;;  %v3648_v6 = vld [vmem:[%s5880_s0 + $0x58] sm:$0xff] }
 0xc29   :  { %4760 = vmatprep.subr.bf16.mxu0 %v5907_v38  ;;  %4805 = vmatprep.subr.bf16.mxu1 %v5907_v38 }
 0xc2a   :  { %v4761_v60 = vpack.c.bf16 %v2537_v27, %v2536_v28  ;;  %v4411_v61 = vpop.f32.mrb[72].mxu1 }
 0xc2b   :  { %v2539_v10 = vmul.f32 %v4411_v61, %v5321_v25  ;;  %v2507_v11 = vpop.f32.mrb[73].mxu1  ;;  %v5910_v61 = vld [vmem:[#allocation10_spill] sm:$0xff] }
 0xc2c   :  { %v2538_v5 = vmul.f32 %v5326_v29, %v2507_v11  ;;  %4762 = vmatpush3.bf16.msra.mxu0 %v4761_v60  ;;  %v4781_v29 = vpack.c.bf16 %v3648_v6, %v3647_v8  ;;  %v5911_v11 = vld [vmem:[#allocation11_spill] sm:$0xff]  ;;  %v5913_v8 = vld [vmem:[#allocation13_spill] sm:$0xff] }
 0xc2d   :  { %4763 = vmatprep.subr.bf16.mxu0 %v5907_v38 }
 0xc2e   :  { %v4764_v12 = vpack.c.bf16 %v2539_v10, %v2538_v5  ;;  %v4414_v49 = vpop.f32.mrb[74].mxu1 }
 0xc2f   :  { %v2541_v51 = vmul.f32 %v4414_v49, %v5334_v35  ;;  %v2517_v54 = vpop.f32.mrb[75].mxu1  ;;  %v4879_v35 = vld [vmem:[%s5881_s1 + $0x8] sm:$0xff] }
 0xc30   :  { %v2540_v25 = vmul.f32 %v5339_v36, %v2517_v54  ;;  %4765 = vmatpush3.bf16.msra.mxu0 %v4764_v12  ;;  %v4880_v36 = vld [vmem:[%s5881_s1 + $0x10] sm:$0xff]  ;;  %v5912_v12 = vld [vmem:[#allocation12_spill] sm:$0xff] }
 0xc31   :  { %4766 = vmatprep.subr.bf16.mxu0 %v5907_v38  ;;  %v4886_v54 = vld [vmem:[%s5885_s5] sm:$0xf]  ;;  %s4939_s5 = smov [#allocation3]  }
 0xc32   :  { %v4767_v57 = vpack.c.bf16 %v2541_v51, %v2540_v25  ;;  %s3430_s27 = sshll.u32 %s4939_s5, 4  ;;  %s3431_s27 = int_to_ptr.vmem [resolvable:$true] %s3430_s27 }
 0xc33   :  { %s4887_s28 = scalar_lea.vmem %s3431_s27, 512  ;;  %p4892_p1 = scmp.lt.s32.totalorder %s3431_s27, %s3431_s27 }
 0xc34   :  { %4768 = vmatpush3.bf16.msra.mxu0 %v4767_v57  ;;  %p4888_p0 = scmp.ne.s32.totalorder %s3431_s27, %s4887_s28  ;;  %p4893_p2 = scmp.lt.s32.totalorder %s4887_s28, %s4887_s28 }
 0xc35   :  { %4782 = vmatprep.subr.bf16.mxu0 %v4781_v29 }
 0xc36   :  { %p4894_p3 = por %p4893_p2, %p4892_p1 }
 0xc37   :  { %4432 = vmatmul.mubr.msk.f32.vlgmr.msra.gmra.mrb[56].mxu0 %vm327_vm1, %v5284_v55  ;;  %v4881_v55 = vld [vmem:[%s5881_s1 + $0x18] sm:$0xff] }
 0xc38   :  { %4784 = vmatpush3.bf16.msra.mxu0 %v4781_v29  ;;  %4457 = vmatprep.mubr.msk.f32.mxu0 %vm60_vm0, %v4878_v18  ;;  %p4895_p4 = pnand %p4894_p3, %p4888_p0 }
 0xc39   :  { %4790 = vmatprep.subr.bf16.mxu0 %v5378_v62 }
 0xc3b   :  { %4458 = vmatmul.mubr.msk.f32.vlgmr.msra.gmra.mrb[58].mxu0 %vm60_vm0, %v4879_v35 }
 0xc3c   :  { %4460 = vmatprep.mubr.msk.f32.mxu0 %vm60_vm0, %v4880_v36  ;;  %4792 = vmatpush3.bf16.msra.mxu0 %v5378_v62  ;;  %v4883_v62 = vld [vmem:[%s5881_s1 + $0x28] sm:$0xff] }
 0xc3d   :  { %4794 = vmatprep.subr.bf16.mxu0 %v5383_v2 }
 0xc3f   :  { %4461 = vmatmul.mubr.msk.f32.gmra.mrb[60].mxu0 %vm60_vm0, %v4881_v55 }
 0xc40   :  { %4463 = vmatprep.mubr.msk.f32.mxu0 %vm60_vm0, %v4882_v13  ;;  %4796 = vmatpush3.bf16.msra.mxu0 %v5383_v2  ;;  %v4885_v2 = vld [vmem:[%s5881_s1 + $0x38] sm:$0xff] }
 0xc41   :  { %4798 = vmatprep.subr.bf16.mxu0 %v5394_v19 }
 0xc43   :  { %4464 = vmatmul.mubr.msk.f32.gmra.mrb[62].mxu0 %vm60_vm0, %v4883_v62 }
 0xc44   :  { %4466 = vmatprep.mubr.msk.f32.mxu0 %vm60_vm0, %v4884_v14  ;;  %4800 = vmatpush3.bf16.msra.mxu0 %v5394_v19 }
 0xc45   :  { %4802 = vmatprep.subr.bf16.mxu0 %v5404_v24 }
 0xc47   :  { %4467 = vmatmul.mubr.msk.f32.gmra.mrb[64].mxu0 %vm60_vm0, %v4885_v2 }
 0xc48   :  { %4804 = vmatpush3.bf16.msra.mxu0 %v5404_v24 }
 0xc49   :  { %4817 = vmatprep.subr.bf16.mxu0 %v5907_v38 }
 0xcfa   :  { %v2678_v42 = vpop.f32.mrb[76].mxu1 }
 0xcfb   :  { %v4452_v20 = vpop.f32.mrb[77].mxu1 }
 0xd0a   :  { %v2608_v50 = vpop.f32.mrb[56].mxu0 }
 0xd0b   :  { %v5780_v23 = vadd.f32 %v2678_v42, %v2608_v50  ;;  %v4433_v52 = vpop.f32.mrb[57].mxu0  ;;  %v3327_v50 = vpop.permute.xlu0 %3326 }
 0xd0e   :  { %v4459_v30 = vpop.f32.mrb[58].mxu0 }
 0xd0f   :  { %v2751_v19 = vpop.f32.mrb[59].mxu0 }
 0xd10   :  { %4473 = vmatprep.mubr.msk.f32.mxu1 %vm60_vm0, %v2751_v19 }
 0xd11   :  { %4474 = vmatmul.mubr.msk.f32.vlgmr.msra.gmra.mrb[78].mxu1 %vm60_vm0, %v4459_v30 }
 0xd12   :  { %v4462_v44 = vpop.f32.mrb[60].mxu0 }
 0xd13   :  { %v2761_v58 = vpop.f32.mrb[61].mxu0 }
 0xd14   :  { %4476 = vmatprep.mubr.msk.f32.mxu1 %vm60_vm0, %v2761_v58 }
 0xd15   :  { %4477 = vmatmul.mubr.msk.f32.gmra.mrb[80].mxu1 %vm60_vm0, %v4462_v44 }
 0xd16   :  { %v4465_v24 = vpop.f32.mrb[62].mxu0 }
 0xd17   :  { %v2771_v59 = vpop.f32.mrb[63].mxu0 }
 0xd18   :  { %4479 = vmatprep.mubr.msk.f32.mxu1 %vm60_vm0, %v2771_v59 }
 0xd19   :  { %4480 = vmatmul.mubr.msk.f32.gmra.mrb[82].mxu1 %vm60_vm0, %v4465_v24 }
 0xd1a   :  { %v4468_v46 = vpop.f32.mrb[64].mxu0 }
 0xd1b   :  { %v2781_v0 = vpop.f32.mrb[65].mxu0 }
 0xd1c   :  { %4482 = vmatprep.mubr.msk.f32.mxu1 %vm60_vm0, %v2781_v0 }
 0xd1d   :  { %4483 = vmatmul.mubr.msk.f32.gmra.mrb[84].mxu1 %vm60_vm0, %v4468_v46 }
 0xd1e   :  { %4529 = vmatprep.mubr.msk.f32.mxu1 %vm4936_vm2, %v5908_v41 }
 0xde4   :  { %v4475_v53 = vpop.f32.mrb[78].mxu1 }
 0xde5   :  { %v2880_v1 = vpop.f32.mrb[79].mxu1 }
 0xde6   :  { %4501 = vmatprep.mubr.msk.f32.mxu0 %vm327_vm1, %v2880_v1 }
 0xde7   :  { %4502 = vmatmul.mubr.msk.f32.vlgmr.msra.gmra.mrb[66].mxu0 %vm327_vm1, %v4475_v53 }
 0xde8   :  { %v4478_v15 = vpop.f32.mrb[80].mxu1  ;;  %4819 = vmatpush3.bf16.msra.mxu0 %v5494_v39 }
 0xde9   :  { %v2890_v56 = vpop.f32.mrb[81].mxu1  ;;  %4820 = vmatprep.subr.bf16.mxu0 %v5907_v38 }
 0xdea   :  { %4504 = vmatprep.mubr.msk.f32.mxu0 %vm327_vm1, %v2890_v56 }
 0xdeb   :  { %4505 = vmatmul.mubr.msk.f32.gmra.mrb[68].mxu0 %vm327_vm1, %v4478_v15 }
 0xdec   :  { %v4481_v16 = vpop.f32.mrb[82].mxu1  ;;  %4822 = vmatpush3.bf16.msra.mxu0 %v5504_v45 }
 0xded   :  { %v2900_v3 = vpop.f32.mrb[83].mxu1  ;;  %4823 = vmatprep.subr.bf16.mxu0 %v5907_v38 }
 0xdee   :  { %4507 = vmatprep.mubr.msk.f32.mxu0 %vm327_vm1, %v2900_v3 }
 0xdef   :  { %4508 = vmatmul.mubr.msk.f32.gmra.mrb[70].mxu0 %vm327_vm1, %v4481_v16 }
 0xdf0   :  { %v4484_v17 = vpop.f32.mrb[84].mxu1  ;;  %4825 = vmatpush3.bf16.msra.mxu0 %v5514_v48 }
 0xdf1   :  { %v2910_v39 = vpop.f32.mrb[85].mxu1  ;;  %4826 = vmatprep.subr.bf16.mxu0 %v5907_v38 }
 0xdf2   :  { %4510 = vmatprep.mubr.msk.f32.mxu0 %vm327_vm1, %v2910_v39 }
 0xdf3   :  { %4511 = vmatmul.mubr.msk.f32.gmra.mrb[72].mxu0 %vm327_vm1, %v4484_v17 }
 0xdf4   :  { %4828 = vmatpush3.bf16.msra.mxu0 %v5524_v21  ;;  %4564 = vmatprep.mubr.msk.f32.mxu0 %vm4936_vm2, %v5908_v41 }
 0xdf5   :  { %4829 = vmatprep.subr.bf16.mxu0 %v5907_v38 }
 0xdf8   :  { %4831 = vmatpush3.bf16.msra.mxu0 %v5534_v34 }
 0xdf9   :  { %4832 = vmatprep.subr.bf16.mxu0 %v5907_v38 }
 0xdfc   :  { %4834 = vmatpush3.bf16.msra.mxu0 %v5544_v40  ;;  %v5909_v40 = vld [vmem:[#allocation9_spill] sm:$0xff] }
 0xdfd   :  { %4835 = vmatprep.subr.bf16.mxu0 %v5907_v38 }
 0xe00   :  { %4837 = vmatpush3.bf16.msra.mxu0 %v5554_v47 }
 0xe01   :  { %4838 = vmatprep.subr.bf16.mxu0 %v5907_v38 }
 0xe04   :  { %4840 = vmatpush3.bf16.msra.mxu0 %v5564_v22 }
 0xeba   :  { %v4503_v45 = vpop.f32.mrb[66].mxu0 }
 0xebb   :  { %v3065_v48 = vmul.f32 %v4503_v45, %v5435_v63  ;;  %v3017_v21 = vpop.f32.mrb[67].mxu0 }
 0xebc   :  { %v3064_v7 = vmul.f32 %v5440_v4, %v3017_v21 }
 0xebe   :  { %v4806_v26 = vpack.c.bf16 %v3065_v48, %v3064_v7  ;;  %v4506_v34 = vpop.f32.mrb[68].mxu0 }
 0xebf   :  { %v3067_v27 = vmul.f32 %v4506_v34, %v5447_v32  ;;  %v3027_v9 = vpop.f32.mrb[69].mxu0 }
 0xec0   :  { %v3066_v28 = vmul.f32 %v5909_v40, %v3027_v9  ;;  %4807 = vmatpush3.bf16.msra.mxu1 %v4806_v26 }
 0xec1   :  { %4808 = vmatprep.subr.bf16.mxu1 %v5907_v38 }
 0xec2   :  { %v4809_v47 = vpack.c.bf16 %v3067_v27, %v3066_v28  ;;  %v4509_v60 = vpop.f32.mrb[70].mxu0 }
 0xec3   :  { %v3069_v22 = vmul.f32 %v4509_v60, %v5910_v61  ;;  %v3037_v10 = vpop.f32.mrb[71].mxu0 }
 0xec4   :  { %v3068_v63 = vmul.f32 %v5911_v11, %v3037_v10  ;;  %4810 = vmatpush3.bf16.msra.mxu1 %v4809_v47 }
 0xec5   :  { %4811 = vmatprep.subr.bf16.mxu1 %v5907_v38 }
 0xec6   :  { %v4812_v4 = vpack.c.bf16 %v3069_v22, %v3068_v63  ;;  %v4512_v5 = vpop.f32.mrb[72].mxu0 }
 0xec7   :  { %v3071_v32 = vmul.f32 %v4512_v5, %v5912_v12  ;;  %v3047_v49 = vpop.f32.mrb[73].mxu0 }
 0xec8   :  { %v3070_v6 = vmul.f32 %v5913_v8, %v3047_v49  ;;  %4813 = vmatpush3.bf16.msra.mxu1 %v4812_v4 }
 0xec9   :  { %4814 = vmatprep.subr.bf16.mxu1 %v5907_v38 }
 0xeca   :  { %v4815_v51 = vpack.c.bf16 %v3071_v32, %v3070_v6 }
 0xecc   :  { %4816 = vmatpush3.bf16.msra.mxu1 %v4815_v51 }
 0xecd   :  { %4567 = vmatprep.subr.mxu1 %v5908_v41 }
 0xecf   :  { %4530 = vmatmul.mubr.msk.f32.vlgmr.msra.gmra.mrb[86].mxu1 %vm327_vm1, %v4886_v54 }
 0xed0   :  { %4568 = vmatpush3.msk.msra.mxu1 %vm1578_vm3, %v5579_v31  ;;  %4569 = vmatprep.mubr.msk.f32.mxu1 %vm4936_vm2, %v5908_v41 }
 0xfa2   :  { %v3138_v25 = vpop.f32.mrb[86].mxu1 }
 0xfa3   :  { %v3142_v29 = vadd.f32 %v3138_v25, %v5780_v23  ;;  %v4531_v38 = vpop.f32.mrb[87].mxu1 }
 0xfa5   :  { %v3150_v57 = vadd.f32 %v5570_v37, %v3142_v29 }
 0xfa7   :  { %v3151_v18 = vmul.f32 %v3150_v57, %v3150_v57 }
 0xfa9   :  { %v3152_v35 = vmul.f32 %v3151_v18, %v3150_v57 }
 0xfab   :  { %v3153_v36 = vmul.f32 0.044715, %v3152_v35 }
 0xfad   :  { %v3154_v55 = vadd.f32 %v3153_v36, %v3150_v57 }
 0xfaf   :  { %v3155_v13 = vmul.f32 0.7978846, %v3154_v55 }
 0xfb1   :  { %4868 = vtanh.f32 %v3155_v13 }
 0xfbb   :  { %v4869_v62 = vpop.eup %4868 }
 0xfbc   :  { %v3157_v14 = vadd.f32 1.0, %v4869_v62 }
 0xfbe   :  { %v3158_v2 = vmul.f32 0.5, %v3157_v14 }
 0xfc0   :  { %v3159_v42 = vmul.f32 %v3158_v2, %v3150_v57 }
 0xfc2   :  { %4565 = vmatmul.mubr.f32.vlgmr.msra.gmra.mrb[74].mxu0 %v3159_v42 }
0x1095   :  { %v3242_v31 = vpop.f32.mrb[74].mxu0 }
0x1096   :  { %v4566_v20 = vpop.f32.mrb[75].mxu0  ;;  %4570 = vmatmul.mubr.msk.f32.vlgmr.msra.gmra.mrb[88].mxu1 %vm1574_vm4, %v3242_v31 }
0x1097   :  { %4574 = vmatprep.mubr.msk.f32.mxu1 %vm1574_vm4, %v5587_v33 }
0x1169   :  { %v3315_v41 = vpop.f32.mrb[88].mxu1 }
0x116a   :  { %v4571_v37 = vpop.f32.mrb[89].mxu1  ;;  %4572 = vmatprep.subr.msk.mxu1 %vm1578_vm3, %v3315_v41 }
0x116b   :  { %4573 = vmatpush3.msk.msra.mxu1 %vm1578_vm3, %v3315_v41 }
0x116c   :  { %4575 = vmatmul.mubr.msk.f32.vlgmr.msra.gmra.mrb[90].mxu1 %vm1574_vm4, %v5623_v43 }
0x123f   :  { %v4576_v23 = vpop.f32.mrb[90].mxu1 }
0x1240   :  { %v3404_v52 = vadd.f32 %v4576_v23, %v3327_v50  ;;  %v3398_v30 = vpop.f32.mrb[91].mxu1 }
0x1241   :  { %v3399_v19 = vadd.f32 %v3398_v30, %v3327_v50 }
0x1242   :  { %3409 = vst.msk [vmem:[#allocation3 + $0x18] sm:$0xff] %vm60_vm0, %v3404_v52  ;;  %v3698_v33 = vmul.f32 -1.442695, %v3404_v52 }
0x1243   :  { %3408 = vst.msk [vmem:[#allocation3 + $0x10] sm:$0xff] %vm60_vm0, %v3399_v19  ;;  %v3697_v44 = vmul.f32 -1.442695, %v3399_v19 }
0x1244   :  { %4870 = vpow2.f32 %v3698_v33 }
0x1245   :  { %4898 = shalt.err (!%p4895_p4)
}
0x1246   :  { %s4899_s30 = scalar_lea.hbm %s5891_s11, 512 }
0x1247   :  { %p4900_p5 = scmp.ne.s32.totalorder %s5891_s11, %s4899_s30  ;;  %p4903_p6 = scmp.lt.u32.totalorder %s4899_s30, %s5891_s11 }
0x1249   :  { %p4905_p7 = pnand %p4903_p6, %p4900_p5 }
0x124b   :  { %4908 = shalt.err (!%p4905_p7)
}
0x124c   :  { %s4940_s15 = smov 128   ;;  %s4941_s16 = smov 8   ;;  %4872 = vpow2.f32 %v3697_v44 }
0x124d   :  { %3436 = dma.vmem_to_hbm [thread:$0]  %s3431_s27, 512, %s5891_s11, [#allocation4], %s4940_s15, %s4940_s15, %s4941_s16  }
0x124e   :  { %v4871_v43 = vpop.eup %4870  ;;  %s4942_s3 = smov [#allocation5]  }
0x124f   :  { %v3417_v24 = vadd.f32 1.0, %v4871_v43  ;;  %s3442_s2 = sshll.u32 %s4942_s3, 4  ;;  %s3443_s2 = int_to_ptr.vmem [resolvable:$true] %s3442_s2 }
0x1250   :  { %s4909_s18 = scalar_lea.vmem %s3443_s2, 512  ;;  %p4914_p9 = scmp.lt.s32.totalorder %s3443_s2, %s3443_s2 }
0x1251   :  { %4874 = vrcp.f32 %v3417_v24  ;;  %p4910_p8 = scmp.ne.s32.totalorder %s3443_s2, %s4909_s18  ;;  %p4915_p10 = scmp.lt.s32.totalorder %s4909_s18, %s4909_s18 }
0x1253   :  { %p4916_p11 = por %p4915_p10, %p4914_p9 }
0x1255   :  { %p4917_p12 = pnand %p4916_p11, %p4910_p8 }
0x1256   :  { %v4873_v58 = vpop.eup %4872 }
0x1257   :  { %v3416_v59 = vadd.f32 1.0, %v4873_v58 }
0x1259   :  { %4876 = vrcp.f32 %v3416_v59 }
0x125b   :  { %v4875_v46 = vpop.eup %4874 }
0x125c   :  { %3424 = vst.msk [vmem:[#allocation5 + $0x18] sm:$0xff] %vm60_vm0, %v4875_v46 }
0x1263   :  { %v4877_v0 = vpop.eup %4876 }
0x1264   :  { %3423 = vst.msk [vmem:[#allocation5 + $0x10] sm:$0xff] %vm60_vm0, %v4877_v0 }
0x1265   :  { %4920 = shalt.err (!%p4917_p12)
}
0x1266   :  { %s4921_s20 = scalar_lea.hbm %s5892_s12, 512 }
0x1267   :  { %p4922_p13 = scmp.ne.s32.totalorder %s5892_s12, %s4921_s20  ;;  %p4925_p0 = scmp.lt.u32.totalorder %s4921_s20, %s5892_s12 }
0x1269   :  { %p4927_p1 = pnand %p4925_p0, %p4922_p13 }
0x126b   :  { %4930 = shalt.err (!%p4927_p1)
}
0x126c   :  { %3448 = dma.vmem_to_hbm [thread:$0]  %s3443_s2, 512, %s5892_s12, [#allocation6], %s4940_s15, %s4940_s15, %s4941_s16  }
0x126d   :  { %4931 = dma.done.wait [#allocation4], 512  }
0x126e   :  { %4932 = vsyncadd [#allocation4], 4294966784 }
0x126f   :  { %4933 = dma.done.wait [#allocation6], 512  }
0x1270   :  { %4934 = vsyncadd [#allocation6], 4294966784 }
0x1271   :  { %3455 = vsyncpa [#allocation4], 1 }
0x1272   :  { %3456 = vsyncpa [#allocation6], 1 }

</bundles_post_ra>
